<compile_context>
chip_gen: v7x
topology: tpu7x:2x2x1
jax: 0.10.0
libtpu: 0.0.40
codegen_flags: <defaults>
</compile_context>

<pallas_src>
import jax
import jax.numpy as jnp
from jax import lax
from jax.experimental import pallas as pl
from jax.experimental.pallas import tpu as pltpu


def _round_up(x, m):
    return (x + m - 1) // m * m


# ----------------------------------------------------------------------------
# Fused multi-layer kernel (channels-first, one image per grid step)
# ----------------------------------------------------------------------------
def _make_paraphraser_kernel(H, W, Cp, n_enc, n_dec):
    Hw = H * W
    n_layers = n_enc + n_dec

    # Mask slot per non-center tap, in (ky, kx) order (matches host packing).
    m_idx = {}
    mi = 0
    for ky in range(3):
        for kx in range(3):
            if (ky, kx) == (1, 1):
                continue
            m_idx[(ky, kx)] = mi
            mi += 1

    def kernel(x_ref, masks_ref, w_ref, b_ref, *rest):
        if n_dec > 0:
            factor_ref, rec_ref, patch_ref = rest
        else:
            factor_ref, patch_ref = rest
            rec_ref = None

        a = x_ref[...]                                    # (Cp, Hw) f32, one image
        for li in range(n_layers):
            # Build the (9*Cp, Hw) im2col patch directly in persistent VMEM
            # scratch: one aligned store per tap, no concatenate copy pass.
            for ky in range(3):
                for kx in range(3):
                    t = ky * 3 + kx
                    dy, dx = ky - 1, kx - 1
                    if dy == 0 and dx == 0:
                        v = a
                    else:
                        off = dy * W + dx
                        # rolled[p] == a[(p + off) % Hw]; every wrapped tap is
                        # killed by the pre-broadcast border mask.
                        v = pltpu.roll(a, (-off) % Hw, axis=1)
                        v = v * masks_ref[m_idx[(ky, kx)]]
                    patch_ref[pl.ds(t * Cp, Cp), :] = v

            # bf16 MXU operands, f32 accumulation.
            patch_bf = patch_ref[...].astype(jnp.bfloat16)
            acc = jnp.dot(w_ref[li], patch_bf,
                          preferred_element_type=jnp.float32)     # (Cp, Hw)
            acc = acc + b_ref[li]                                  # bias (Cp, 1)
            a = jnp.maximum(acc, 0.1 * acc)                        # LeakyReLU(0.1)

            if li == n_enc - 1:
                factor_ref[...] = a
        if n_dec > 0:
            rec_ref[...] = a

    return kernel


# ----------------------------------------------------------------------------
# Parameter packing: equivalent-conv OIHW -> stacked (L, Cp, 9*Cp) bf16 weights
# ----------------------------------------------------------------------------
def _pack_layers(layers, Cp):
    w_mats, b_cols = [], []
    for (w, b) in layers:
        co, ci = int(w.shape[0]), int(w.shape[1])
        wt = jnp.transpose(w, (0, 2, 3, 1))                        # (co, 3, 3, ci)
        wt = jnp.pad(wt, ((0, Cp - co), (0, 0), (0, 0), (0, Cp - ci)))
        w_mats.append(wt.reshape(Cp, 9 * Cp))
        b_cols.append(jnp.pad(b.astype(jnp.float32), (0, Cp - co)).reshape(Cp, 1))
    w_all = jnp.stack(w_mats).astype(jnp.bfloat16)                 # (L, Cp, 9*Cp)
    b_all = jnp.stack(b_cols).astype(jnp.float32)                  # (L, Cp, 1)
    return w_all, b_all


def _border_masks(H, W, Cp):
    """Pre-broadcast 0/1 masks for the 8 non-center taps: (8, Cp, H*W) f32."""
    yy = jnp.repeat(jnp.arange(H, dtype=jnp.int32), W)
    xx = jnp.tile(jnp.arange(W, dtype=jnp.int32), H)
    rows = []
    for dy in (-1, 0, 1):
        for dx in (-1, 0, 1):
            if dy == 0 and dx == 0:
                continue
            ok = jnp.ones((H * W,), dtype=bool)
            if dy == -1:
                ok = ok & (yy >= 1)
            elif dy == 1:
                ok = ok & (yy <= H - 2)
            if dx == -1:
                ok = ok & (xx >= 1)
            elif dx == 1:
                ok = ok & (xx <= W - 2)
            rows.append(ok)
    m = jnp.stack(rows).astype(jnp.float32)                        # (8, Hw)
    return jnp.broadcast_to(m[:, None, :], (8, Cp, H * W))


# ----------------------------------------------------------------------------
# Forward (NCHW in / NCHW out, matching the PyTorch module)
# ----------------------------------------------------------------------------
def paraphraser_forward(f_s_nchw, layers, is_factor=False):
    """layers: list of 6 (equivalent-conv OIHW weight, bias), encoder then decoder."""
    N, C, H, W = f_s_nchw.shape
    Hw = H * W
    # One image per block on the lane axis; required for the roll+mask trick
    # and for lane-dense (unmasked) output stores.
    assert Hw % 128 == 0, "image pixels per block must be a multiple of 128 lanes"

    n_layers = len(layers)
    n_enc = n_layers // 2
    n_dec = 0 if is_factor else n_layers - n_enc
    L = n_enc + n_dec

    chan = [C] + [int(w.shape[0]) for (w, _) in layers]            # channel chain
    Cp = _round_up(max(chan), 8)                                   # common sublane pad

    w_all, b_all = _pack_layers(layers[:L], Cp)
    masks = _border_masks(H, W, Cp)

    # NCHW -> channels-first flat layout (Cp, N*H*W); batch-major, row-major spatial.
    x2 = jnp.transpose(f_s_nchw, (1, 0, 2, 3)).reshape(C, N * Hw).astype(jnp.float32)
    x2 = jnp.pad(x2, ((0, Cp - C), (0, 0)))

    kernel = _make_paraphraser_kernel(H, W, Cp, n_enc, n_dec)

    io_block = pl.BlockSpec((Cp, Hw), lambda n: (0, n))
    if n_dec > 0:
        out_shape = (jax.ShapeDtypeStruct((Cp, N * Hw), jnp.float32),
                     jax.ShapeDtypeStruct((Cp, N * Hw), jnp.float32))
        out_specs = (io_block, io_block)
    else:
        out_shape = jax.ShapeDtypeStruct((Cp, N * Hw), jnp.float32)
        out_specs = io_block

    outs = pl.pallas_call(
        kernel,
        out_shape=out_shape,
        grid=(N,),
        in_specs=[
            io_block,                                              # x (per-image block)
            pl.BlockSpec((8, Cp, Hw), lambda n: (0, 0, 0)),        # masks (resident)
            pl.BlockSpec((L, Cp, 9 * Cp), lambda n: (0, 0, 0)),    # packed weights
            pl.BlockSpec((L, Cp, 1), lambda n: (0, 0, 0)),         # packed biases
        ],
        out_specs=out_specs,
        scratch_shapes=[pltpu.VMEM((9 * Cp, Hw), jnp.float32)],    # im2col patch
        compiler_params=pltpu.CompilerParams(
            dimension_semantics=("parallel",)),
    )(x2, masks, w_all, b_all)

    def unflat(flat, c):
        return flat[:c].reshape(c, N, H, W).transpose(1, 0, 2, 3)

    if n_dec == 0:
        return unflat(outs, chan[n_enc])
    factor_flat, rec_flat = outs
    return unflat(factor_flat, chan[n_enc]), unflat(rec_flat, chan[n_layers])


# ----------------------------------------------------------------------------
# Deterministic PyTorch-style uniform init (conv OIHW / convT IOHW -> equiv conv)
# ----------------------------------------------------------------------------
def init_paraphraser_params(t_shape, k=0.5, seed=42):
    in_c = t_shape[1]
    out_c = int(t_shape[1] * k)
    keys = jax.random.split(jax.random.PRNGKey(seed), 12)

    def u(key, shape, fan_in):
        bound = 1.0 / (fan_in ** 0.5)
        return jax.random.uniform(key, shape, jnp.float32, -bound, bound)

    def conv(kw, kb, ci, co):
        fan = ci * 9
        return u(kw, (co, ci, 3, 3), fan), u(kb, (co,), fan)       # OIHW (already conv)

    def convT(kw, kb, ci, co):
        fan = co * 9
        w_t = u(kw, (ci, co, 3, 3), fan)                           # torch ConvTranspose layout
        b = u(kb, (co,), fan)
        # ConvTranspose2d(k=3, s=1, p=1) == conv with flipped kernel, swapped channels.
        w_eq = jnp.transpose(w_t[:, :, ::-1, ::-1], (1, 0, 2, 3))  # -> OIHW
        return w_eq, b

    return [
        conv(keys[0], keys[1], in_c, in_c),
        conv(keys[2], keys[3], in_c, out_c),
        conv(keys[4], keys[5], out_c, out_c),
        convT(keys[6], keys[7], out_c, out_c),
        convT(keys[8], keys[9], out_c, in_c),
        convT(keys[10], keys[11], in_c, in_c),
    ]


# ----------------------------------------------------------------------------
# Pure-JAX reference (lax.conv) for the full forward, used as a sanity check.
# ----------------------------------------------------------------------------
def _reference_forward(x_nchw, layers):
    def conv_lrelu(h, w, b):
        y = lax.conv_general_dilated(
            h, w, window_strides=(1, 1), padding=((1, 1), (1, 1)),
            dimension_numbers=("NCHW", "OIHW", "NCHW"),
            precision=lax.Precision.HIGHEST)
        y = y + b[None, :, None, None]
        return jnp.where(y > 0, y, 0.1 * y)

    h = x_nchw
    for (w, b) in layers[:3]:
        h = conv_lrelu(h, w, b)
    factor = h
    for (w, b) in layers[3:]:
        h = conv_lrelu(h, w, b)
    return factor, h


if __name__ == "__main__":
    t_shape = (2, 4, 16, 16)              # (N, C, H, W); k=0.5 -> 2 factor channels
    layers = init_paraphraser_params(t_shape, k=0.5, seed=42)
    x = jax.random.normal(jax.random.PRNGKey(0), t_shape, jnp.float32)

    fwd = jax.jit(paraphraser_forward, static_argnames=("is_factor",))

    factor, rec = fwd(x, layers)
    factor = jax.block_until_ready(factor)
    rec = jax.block_until_ready(rec)

    assert factor.shape == (2, 2, 16, 16), factor.shape
    assert rec.shape == (2, 4, 16, 16), rec.shape

    # Full-network check against a pure-JAX conv reference (tolerance covers the
    # bf16 MXU operands; structural bugs give O(1) error).
    f_ref, r_ref = _reference_forward(x, layers)
    err_f = float(jnp.max(jnp.abs(factor - f_ref)))
    err_r = float(jnp.max(jnp.abs(rec - r_ref)))
    assert err_f < 3e-2, ("factor max abs err", err_f)
    assert err_r < 3e-2, ("rec max abs err", err_r)

    # Encoder-only (is_factor=True) path: 3-layer kernel variant must match the
    # factor produced by the full kernel bit-for-bit (same ops, same order).
    factor_only = jax.block_until_ready(fwd(x, layers, is_factor=True))
    assert factor_only.shape == (2, 2, 16, 16), factor_only.shape
    assert jnp.allclose(factor_only, factor, atol=1e-6), \
        float(jnp.max(jnp.abs(factor_only - factor)))

    print("KERNEL_OK")
</pallas_src>

<mosaic_0001>
module attributes {stable_mosaic.version = 11 : i64} {
  func.func @kernel(%arg0: i32, %arg1: memref<8x256xf32, #tpu.memory_space<vmem>>, %arg2: memref<8x8x256xf32, #tpu.memory_space<vmem>>, %arg3: memref<6x8x72xbf16, #tpu.memory_space<vmem>>, %arg4: memref<6x8x1xf32, #tpu.memory_space<vmem>>, %arg5: memref<8x256xf32, #tpu.memory_space<vmem>>, %arg6: memref<8x256xf32, #tpu.memory_space<vmem>>, %arg7: memref<72x256xf32, #tpu.memory_space<vmem>>) attributes {dimension_semantics = [#tpu.dimension_semantics<parallel>], iteration_bounds = array<i64: 2>, scalar_prefetch = 0 : i64, scratch_operands = 1 : i64, tpu.core_type = #tpu.core_type<tc>, window_params = [{transform_indices = @transform_0, window_bounds = array<i64: 8, 256>}, {pipeline_mode = #tpu.pipeline_mode<synchronous>, transform_indices = @transform_1, window_bounds = array<i64: 8, 8, 256>}, {pipeline_mode = #tpu.pipeline_mode<synchronous>, transform_indices = @transform_2, window_bounds = array<i64: 6, 8, 72>}, {pipeline_mode = #tpu.pipeline_mode<synchronous>, transform_indices = @transform_3, window_bounds = array<i64: 6, 8, 1>}, {transform_indices = @transform_4, window_bounds = array<i64: 8, 256>}, {transform_indices = @transform_5, window_bounds = array<i64: 8, 256>}]} {
    %c0 = arith.constant 0 : index
    %c0_0 = arith.constant 0 : index
    %0 = vector.load %arg1[%c0, %c0_0] : memref<8x256xf32, #tpu.memory_space<vmem>>, vector<8x256xf32>
    %c17_i32 = arith.constant 17 : i32
    %1 = tpu.dynamic_rotate %0 by %c17_i32 dim 1 : vector<8x256xf32>, i32 -> vector<8x256xf32>
    %c0_1 = arith.constant 0 : index
    %c0_2 = arith.constant 0 : index
    %c0_3 = arith.constant 0 : index
    %2 = vector.load %arg2[%c0_1, %c0_2, %c0_3] : memref<8x8x256xf32, #tpu.memory_space<vmem>>, vector<1x8x256xf32>
    %3 = vector.shape_cast %2 : vector<1x8x256xf32> to vector<8x256xf32>
    %4 = arith.mulf %1, %3 : vector<8x256xf32>
    %c0_4 = arith.constant 0 : index
    %c0_5 = arith.constant 0 : index
    %5 = vector.load %arg7[%c0_4, %c0_5] : memref<72x256xf32, #tpu.memory_space<vmem>>, vector<8x256xf32>
    tpu.vector_store %arg7[%c0_4, %c0_5], %4 {strides = array<i32>} : memref<72x256xf32, #tpu.memory_space<vmem>>, vector<8x256xf32>,
    %c16_i32 = arith.constant 16 : i32
    %6 = tpu.dynamic_rotate %0 by %c16_i32 dim 1 : vector<8x256xf32>, i32 -> vector<8x256xf32>
    %c1 = arith.constant 1 : index
    %c0_6 = arith.constant 0 : index
    %c0_7 = arith.constant 0 : index
    %7 = vector.load %arg2[%c1, %c0_6, %c0_7] : memref<8x8x256xf32, #tpu.memory_space<vmem>>, vector<1x8x256xf32>
    %8 = vector.shape_cast %7 : vector<1x8x256xf32> to vector<8x256xf32>
    %9 = arith.mulf %6, %8 : vector<8x256xf32>
    %c8 = arith.constant 8 : index
    %c0_8 = arith.constant 0 : index
    %10 = vector.load %arg7[%c8, %c0_8] : memref<72x256xf32, #tpu.memory_space<vmem>>, vector<8x256xf32>
    tpu.vector_store %arg7[%c8, %c0_8], %9 {strides = array<i32>} : memref<72x256xf32, #tpu.memory_space<vmem>>, vector<8x256xf32>,
    %c15_i32 = arith.constant 15 : i32
    %11 = tpu.dynamic_rotate %0 by %c15_i32 dim 1 : vector<8x256xf32>, i32 -> vector<8x256xf32>
    %c2 = arith.constant 2 : index
    %c0_9 = arith.constant 0 : index
    %c0_10 = arith.constant 0 : index
    %12 = vector.load %arg2[%c2, %c0_9, %c0_10] : memref<8x8x256xf32, #tpu.memory_space<vmem>>, vector<1x8x256xf32>
    %13 = vector.shape_cast %12 : vector<1x8x256xf32> to vector<8x256xf32>
    %14 = arith.mulf %11, %13 : vector<8x256xf32>
    %c16 = arith.constant 16 : index
    %c0_11 = arith.constant 0 : index
    %15 = vector.load %arg7[%c16, %c0_11] : memref<72x256xf32, #tpu.memory_space<vmem>>, vector<8x256xf32>
    tpu.vector_store %arg7[%c16, %c0_11], %14 {strides = array<i32>} : memref<72x256xf32, #tpu.memory_space<vmem>>, vector<8x256xf32>,
    %c1_i32 = arith.constant 1 : i32
    %16 = tpu.dynamic_rotate %0 by %c1_i32 dim 1 : vector<8x256xf32>, i32 -> vector<8x256xf32>
    %c3 = arith.constant 3 : index
    %c0_12 = arith.constant 0 : index
    %c0_13 = arith.constant 0 : index
    %17 = vector.load %arg2[%c3, %c0_12, %c0_13] : memref<8x8x256xf32, #tpu.memory_space<vmem>>, vector<1x8x256xf32>
    %18 = vector.shape_cast %17 : vector<1x8x256xf32> to vector<8x256xf32>
    %19 = arith.mulf %16, %18 : vector<8x256xf32>
    %c24 = arith.constant 24 : index
    %c0_14 = arith.constant 0 : index
    %20 = vector.load %arg7[%c24, %c0_14] : memref<72x256xf32, #tpu.memory_space<vmem>>, vector<8x256xf32>
    tpu.vector_store %arg7[%c24, %c0_14], %19 {strides = array<i32>} : memref<72x256xf32, #tpu.memory_space<vmem>>, vector<8x256xf32>,
    %c32 = arith.constant 32 : index
    %c0_15 = arith.constant 0 : index
    %21 = vector.load %arg7[%c32, %c0_15] : memref<72x256xf32, #tpu.memory_space<vmem>>, vector<8x256xf32>
    tpu.vector_store %arg7[%c32, %c0_15], %0 {strides = array<i32>} : memref<72x256xf32, #tpu.memory_space<vmem>>, vector<8x256xf32>,
    %c255_i32 = arith.constant 255 : i32
    %22 = tpu.dynamic_rotate %0 by %c255_i32 dim 1 : vector<8x256xf32>, i32 -> vector<8x256xf32>
    %c4 = arith.constant 4 : index
    %c0_16 = arith.constant 0 : index
    %c0_17 = arith.constant 0 : index
    %23 = vector.load %arg2[%c4, %c0_16, %c0_17] : memref<8x8x256xf32, #tpu.memory_space<vmem>>, vector<1x8x256xf32>
    %24 = vector.shape_cast %23 : vector<1x8x256xf32> to vector<8x256xf32>
    %25 = arith.mulf %22, %24 : vector<8x256xf32>
    %c40 = arith.constant 40 : index
    %c0_18 = arith.constant 0 : index
    %26 = vector.load %arg7[%c40, %c0_18] : memref<72x256xf32, #tpu.memory_space<vmem>>, vector<8x256xf32>
    tpu.vector_store %arg7[%c40, %c0_18], %25 {strides = array<i32>} : memref<72x256xf32, #tpu.memory_space<vmem>>, vector<8x256xf32>,
    %c241_i32 = arith.constant 241 : i32
    %27 = tpu.dynamic_rotate %0 by %c241_i32 dim 1 : vector<8x256xf32>, i32 -> vector<8x256xf32>
    %c5 = arith.constant 5 : index
    %c0_19 = arith.constant 0 : index
    %c0_20 = arith.constant 0 : index
    %28 = vector.load %arg2[%c5, %c0_19, %c0_20] : memref<8x8x256xf32, #tpu.memory_space<vmem>>, vector<1x8x256xf32>
    %29 = vector.shape_cast %28 : vector<1x8x256xf32> to vector<8x256xf32>
    %30 = arith.mulf %27, %29 : vector<8x256xf32>
    %c48 = arith.constant 48 : index
    %c0_21 = arith.constant 0 : index
    %31 = vector.load %arg7[%c48, %c0_21] : memref<72x256xf32, #tpu.memory_space<vmem>>, vector<8x256xf32>
    tpu.vector_store %arg7[%c48, %c0_21], %30 {strides = array<i32>} : memref<72x256xf32, #tpu.memory_space<vmem>>, vector<8x256xf32>,
    %c240_i32 = arith.constant 240 : i32
    %32 = tpu.dynamic_rotate %0 by %c240_i32 dim 1 : vector<8x256xf32>, i32 -> vector<8x256xf32>
    %c6 = arith.constant 6 : index
    %c0_22 = arith.constant 0 : index
    %c0_23 = arith.constant 0 : index
    %33 = vector.load %arg2[%c6, %c0_22, %c0_23] : memref<8x8x256xf32, #tpu.memory_space<vmem>>, vector<1x8x256xf32>
    %34 = vector.shape_cast %33 : vector<1x8x256xf32> to vector<8x256xf32>
    %35 = arith.mulf %32, %34 : vector<8x256xf32>
    %c56 = arith.constant 56 : index
    %c0_24 = arith.constant 0 : index
    %36 = vector.load %arg7[%c56, %c0_24] : memref<72x256xf32, #tpu.memory_space<vmem>>, vector<8x256xf32>
    tpu.vector_store %arg7[%c56, %c0_24], %35 {strides = array<i32>} : memref<72x256xf32, #tpu.memory_space<vmem>>, vector<8x256xf32>,
    %c239_i32 = arith.constant 239 : i32
    %37 = tpu.dynamic_rotate %0 by %c239_i32 dim 1 : vector<8x256xf32>, i32 -> vector<8x256xf32>
    %c7 = arith.constant 7 : index
    %c0_25 = arith.constant 0 : index
    %c0_26 = arith.constant 0 : index
    %38 = vector.load %arg2[%c7, %c0_25, %c0_26] : memref<8x8x256xf32, #tpu.memory_space<vmem>>, vector<1x8x256xf32>
    %39 = vector.shape_cast %38 : vector<1x8x256xf32> to vector<8x256xf32>
    %40 = arith.mulf %37, %39 : vector<8x256xf32>
    %c64 = arith.constant 64 : index
    %c0_27 = arith.constant 0 : index
    %41 = vector.load %arg7[%c64, %c0_27] : memref<72x256xf32, #tpu.memory_space<vmem>>, vector<8x256xf32>
    tpu.vector_store %arg7[%c64, %c0_27], %40 {strides = array<i32>} : memref<72x256xf32, #tpu.memory_space<vmem>>, vector<8x256xf32>,
    %c0_28 = arith.constant 0 : index
    %c0_29 = arith.constant 0 : index
    %42 = vector.load %arg7[%c0_28, %c0_29] : memref<72x256xf32, #tpu.memory_space<vmem>>, vector<72x256xf32>
    %43 = arith.truncf %42 : vector<72x256xf32> to vector<72x256xbf16>
    %c0_30 = arith.constant 0 : index
    %c0_31 = arith.constant 0 : index
    %c0_32 = arith.constant 0 : index
    %44 = vector.load %arg3[%c0_30, %c0_31, %c0_32] : memref<6x8x72xbf16, #tpu.memory_space<vmem>>, vector<1x8x72xbf16>
    %45 = vector.shape_cast %44 : vector<1x8x72xbf16> to vector<8x72xbf16>
    %cst = arith.constant dense<0.000000e+00> : vector<8x256xf32>
    %46 = tpu.matmul %45, %43, %cst {dimension_numbers = #tpu.dot_dimension_numbers<[1], [0], [0], [1], [0, 0, 1, 1], [], []>} : vector<8x72xbf16>, vector<72x256xbf16>, vector<8x256xf32> -> vector<8x256xf32>
    %c0_33 = arith.constant 0 : index
    %c0_34 = arith.constant 0 : index
    %c0_35 = arith.constant 0 : index
    %47 = vector.load %arg4[%c0_33, %c0_34, %c0_35] : memref<6x8x1xf32, #tpu.memory_space<vmem>>, vector<1x8x1xf32>
    %48 = vector.shape_cast %47 : vector<1x8x1xf32> to vector<8x1xf32>
    %49 = vector.broadcast %48 : vector<8x1xf32> to vector<8x256xf32>
    %50 = arith.addf %46, %49 : vector<8x256xf32>
    %cst_36 = arith.constant 1.000000e-01 : f32
    %51 = vector.broadcast %cst_36 : f32 to vector<8x256xf32>
    %52 = arith.mulf %51, %50 : vector<8x256xf32>
    %53 = arith.maximumf %50, %52 : vector<8x256xf32>
    %c17_i32_37 = arith.constant 17 : i32
    %54 = tpu.dynamic_rotate %53 by %c17_i32_37 dim 1 : vector<8x256xf32>, i32 -> vector<8x256xf32>
    %c0_38 = arith.constant 0 : index
    %c0_39 = arith.constant 0 : index
    %c0_40 = arith.constant 0 : index
    %55 = vector.load %arg2[%c0_38, %c0_39, %c0_40] : memref<8x8x256xf32, #tpu.memory_space<vmem>>, vector<1x8x256xf32>
    %56 = vector.shape_cast %55 : vector<1x8x256xf32> to vector<8x256xf32>
    %57 = arith.mulf %54, %56 : vector<8x256xf32>
    %c0_41 = arith.constant 0 : index
    %c0_42 = arith.constant 0 : index
    %58 = vector.load %arg7[%c0_41, %c0_42] : memref<72x256xf32, #tpu.memory_space<vmem>>, vector<8x256xf32>
    tpu.vector_store %arg7[%c0_41, %c0_42], %57 {strides = array<i32>} : memref<72x256xf32, #tpu.memory_space<vmem>>, vector<8x256xf32>,
    %c16_i32_43 = arith.constant 16 : i32
    %59 = tpu.dynamic_rotate %53 by %c16_i32_43 dim 1 : vector<8x256xf32>, i32 -> vector<8x256xf32>
    %c1_44 = arith.constant 1 : index
    %c0_45 = arith.constant 0 : index
    %c0_46 = arith.constant 0 : index
    %60 = vector.load %arg2[%c1_44, %c0_45, %c0_46] : memref<8x8x256xf32, #tpu.memory_space<vmem>>, vector<1x8x256xf32>
    %61 = vector.shape_cast %60 : vector<1x8x256xf32> to vector<8x256xf32>
    %62 = arith.mulf %59, %61 : vector<8x256xf32>
    %c8_47 = arith.constant 8 : index
    %c0_48 = arith.constant 0 : index
    %63 = vector.load %arg7[%c8_47, %c0_48] : memref<72x256xf32, #tpu.memory_space<vmem>>, vector<8x256xf32>
    tpu.vector_store %arg7[%c8_47, %c0_48], %62 {strides = array<i32>} : memref<72x256xf32, #tpu.memory_space<vmem>>, vector<8x256xf32>,
    %c15_i32_49 = arith.constant 15 : i32
    %64 = tpu.dynamic_rotate %53 by %c15_i32_49 dim 1 : vector<8x256xf32>, i32 -> vector<8x256xf32>
    %c2_50 = arith.constant 2 : index
    %c0_51 = arith.constant 0 : index
    %c0_52 = arith.constant 0 : index
    %65 = vector.load %arg2[%c2_50, %c0_51, %c0_52] : memref<8x8x256xf32, #tpu.memory_space<vmem>>, vector<1x8x256xf32>
    %66 = vector.shape_cast %65 : vector<1x8x256xf32> to vector<8x256xf32>
    %67 = arith.mulf %64, %66 : vector<8x256xf32>
    %c16_53 = arith.constant 16 : index
    %c0_54 = arith.constant 0 : index
    %68 = vector.load %arg7[%c16_53, %c0_54] : memref<72x256xf32, #tpu.memory_space<vmem>>, vector<8x256xf32>
    tpu.vector_store %arg7[%c16_53, %c0_54], %67 {strides = array<i32>} : memref<72x256xf32, #tpu.memory_space<vmem>>, vector<8x256xf32>,
    %c1_i32_55 = arith.constant 1 : i32
    %69 = tpu.dynamic_rotate %53 by %c1_i32_55 dim 1 : vector<8x256xf32>, i32 -> vector<8x256xf32>
    %c3_56 = arith.constant 3 : index
    %c0_57 = arith.constant 0 : index
    %c0_58 = arith.constant 0 : index
    %70 = vector.load %arg2[%c3_56, %c0_57, %c0_58] : memref<8x8x256xf32, #tpu.memory_space<vmem>>, vector<1x8x256xf32>
    %71 = vector.shape_cast %70 : vector<1x8x256xf32> to vector<8x256xf32>
    %72 = arith.mulf %69, %71 : vector<8x256xf32>
    %c24_59 = arith.constant 24 : index
    %c0_60 = arith.constant 0 : index
    %73 = vector.load %arg7[%c24_59, %c0_60] : memref<72x256xf32, #tpu.memory_space<vmem>>, vector<8x256xf32>
    tpu.vector_store %arg7[%c24_59, %c0_60], %72 {strides = array<i32>} : memref<72x256xf32, #tpu.memory_space<vmem>>, vector<8x256xf32>,
    %c32_61 = arith.constant 32 : index
    %c0_62 = arith.constant 0 : index
    %74 = vector.load %arg7[%c32_61, %c0_62] : memref<72x256xf32, #tpu.memory_space<vmem>>, vector<8x256xf32>
    tpu.vector_store %arg7[%c32_61, %c0_62], %53 {strides = array<i32>} : memref<72x256xf32, #tpu.memory_space<vmem>>, vector<8x256xf32>,
    %c255_i32_63 = arith.constant 255 : i32
    %75 = tpu.dynamic_rotate %53 by %c255_i32_63 dim 1 : vector<8x256xf32>, i32 -> vector<8x256xf32>
    %c4_64 = arith.constant 4 : index
    %c0_65 = arith.constant 0 : index
    %c0_66 = arith.constant 0 : index
    %76 = vector.load %arg2[%c4_64, %c0_65, %c0_66] : memref<8x8x256xf32, #tpu.memory_space<vmem>>, vector<1x8x256xf32>
    %77 = vector.shape_cast %76 : vector<1x8x256xf32> to vector<8x256xf32>
    %78 = arith.mulf %75, %77 : vector<8x256xf32>
    %c40_67 = arith.constant 40 : index
    %c0_68 = arith.constant 0 : index
    %79 = vector.load %arg7[%c40_67, %c0_68] : memref<72x256xf32, #tpu.memory_space<vmem>>, vector<8x256xf32>
    tpu.vector_store %arg7[%c40_67, %c0_68], %78 {strides = array<i32>} : memref<72x256xf32, #tpu.memory_space<vmem>>, vector<8x256xf32>,
    %c241_i32_69 = arith.constant 241 : i32
    %80 = tpu.dynamic_rotate %53 by %c241_i32_69 dim 1 : vector<8x256xf32>, i32 -> vector<8x256xf32>
    %c5_70 = arith.constant 5 : index
    %c0_71 = arith.constant 0 : index
    %c0_72 = arith.constant 0 : index
    %81 = vector.load %arg2[%c5_70, %c0_71, %c0_72] : memref<8x8x256xf32, #tpu.memory_space<vmem>>, vector<1x8x256xf32>
    %82 = vector.shape_cast %81 : vector<1x8x256xf32> to vector<8x256xf32>
    %83 = arith.mulf %80, %82 : vector<8x256xf32>
    %c48_73 = arith.constant 48 : index
    %c0_74 = arith.constant 0 : index
    %84 = vector.load %arg7[%c48_73, %c0_74] : memref<72x256xf32, #tpu.memory_space<vmem>>, vector<8x256xf32>
    tpu.vector_store %arg7[%c48_73, %c0_74], %83 {strides = array<i32>} : memref<72x256xf32, #tpu.memory_space<vmem>>, vector<8x256xf32>,
    %c240_i32_75 = arith.constant 240 : i32
    %85 = tpu.dynamic_rotate %53 by %c240_i32_75 dim 1 : vector<8x256xf32>, i32 -> vector<8x256xf32>
    %c6_76 = arith.constant 6 : index
    %c0_77 = arith.constant 0 : index
    %c0_78 = arith.constant 0 : index
    %86 = vector.load %arg2[%c6_76, %c0_77, %c0_78] : memref<8x8x256xf32, #tpu.memory_space<vmem>>, vector<1x8x256xf32>
    %87 = vector.shape_cast %86 : vector<1x8x256xf32> to vector<8x256xf32>
    %88 = arith.mulf %85, %87 : vector<8x256xf32>
    %c56_79 = arith.constant 56 : index
    %c0_80 = arith.constant 0 : index
    %89 = vector.load %arg7[%c56_79, %c0_80] : memref<72x256xf32, #tpu.memory_space<vmem>>, vector<8x256xf32>
    tpu.vector_store %arg7[%c56_79, %c0_80], %88 {strides = array<i32>} : memref<72x256xf32, #tpu.memory_space<vmem>>, vector<8x256xf32>,
    %c239_i32_81 = arith.constant 239 : i32
    %90 = tpu.dynamic_rotate %53 by %c239_i32_81 dim 1 : vector<8x256xf32>, i32 -> vector<8x256xf32>
    %c7_82 = arith.constant 7 : index
    %c0_83 = arith.constant 0 : index
    %c0_84 = arith.constant 0 : index
    %91 = vector.load %arg2[%c7_82, %c0_83, %c0_84] : memref<8x8x256xf32, #tpu.memory_space<vmem>>, vector<1x8x256xf32>
    %92 = vector.shape_cast %91 : vector<1x8x256xf32> to vector<8x256xf32>
    %93 = arith.mulf %90, %92 : vector<8x256xf32>
    %c64_85 = arith.constant 64 : index
    %c0_86 = arith.constant 0 : index
    %94 = vector.load %arg7[%c64_85, %c0_86] : memref<72x256xf32, #tpu.memory_space<vmem>>, vector<8x256xf32>
    tpu.vector_store %arg7[%c64_85, %c0_86], %93 {strides = array<i32>} : memref<72x256xf32, #tpu.memory_space<vmem>>, vector<8x256xf32>,
    %c0_87 = arith.constant 0 : index
    %c0_88 = arith.constant 0 : index
    %95 = vector.load %arg7[%c0_87, %c0_88] : memref<72x256xf32, #tpu.memory_space<vmem>>, vector<72x256xf32>
    %96 = arith.truncf %95 : vector<72x256xf32> to vector<72x256xbf16>
    %c1_89 = arith.constant 1 : index
    %c0_90 = arith.constant 0 : index
    %c0_91 = arith.constant 0 : index
    %97 = vector.load %arg3[%c1_89, %c0_90, %c0_91] : memref<6x8x72xbf16, #tpu.memory_space<vmem>>, vector<1x8x72xbf16>
    %98 = vector.shape_cast %97 : vector<1x8x72xbf16> to vector<8x72xbf16>
    %cst_92 = arith.constant dense<0.000000e+00> : vector<8x256xf32>
    %99 = tpu.matmul %98, %96, %cst_92 {dimension_numbers = #tpu.dot_dimension_numbers<[1], [0], [0], [1], [0, 0, 1, 1], [], []>} : vector<8x72xbf16>, vector<72x256xbf16>, vector<8x256xf32> -> vector<8x256xf32>
    %c1_93 = arith.constant 1 : index
    %c0_94 = arith.constant 0 : index
    %c0_95 = arith.constant 0 : index
    %100 = vector.load %arg4[%c1_93, %c0_94, %c0_95] : memref<6x8x1xf32, #tpu.memory_space<vmem>>, vector<1x8x1xf32>
    %101 = vector.shape_cast %100 : vector<1x8x1xf32> to vector<8x1xf32>
    %102 = vector.broadcast %101 : vector<8x1xf32> to vector<8x256xf32>
    %103 = arith.addf %99, %102 : vector<8x256xf32>
    %cst_96 = arith.constant 1.000000e-01 : f32
    %104 = vector.broadcast %cst_96 : f32 to vector<8x256xf32>
    %105 = arith.mulf %104, %103 : vector<8x256xf32>
    %106 = arith.maximumf %103, %105 : vector<8x256xf32>
    %c17_i32_97 = arith.constant 17 : i32
    %107 = tpu.dynamic_rotate %106 by %c17_i32_97 dim 1 : vector<8x256xf32>, i32 -> vector<8x256xf32>
    %c0_98 = arith.constant 0 : index
    %c0_99 = arith.constant 0 : index
    %c0_100 = arith.constant 0 : index
    %108 = vector.load %arg2[%c0_98, %c0_99, %c0_100] : memref<8x8x256xf32, #tpu.memory_space<vmem>>, vector<1x8x256xf32>
    %109 = vector.shape_cast %108 : vector<1x8x256xf32> to vector<8x256xf32>
    %110 = arith.mulf %107, %109 : vector<8x256xf32>
    %c0_101 = arith.constant 0 : index
    %c0_102 = arith.constant 0 : index
    %111 = vector.load %arg7[%c0_101, %c0_102] : memref<72x256xf32, #tpu.memory_space<vmem>>, vector<8x256xf32>
    tpu.vector_store %arg7[%c0_101, %c0_102], %110 {strides = array<i32>} : memref<72x256xf32, #tpu.memory_space<vmem>>, vector<8x256xf32>,
    %c16_i32_103 = arith.constant 16 : i32
    %112 = tpu.dynamic_rotate %106 by %c16_i32_103 dim 1 : vector<8x256xf32>, i32 -> vector<8x256xf32>
    %c1_104 = arith.constant 1 : index
    %c0_105 = arith.constant 0 : index
    %c0_106 = arith.constant 0 : index
    %113 = vector.load %arg2[%c1_104, %c0_105, %c0_106] : memref<8x8x256xf32, #tpu.memory_space<vmem>>, vector<1x8x256xf32>
    %114 = vector.shape_cast %113 : vector<1x8x256xf32> to vector<8x256xf32>
    %115 = arith.mulf %112, %114 : vector<8x256xf32>
    %c8_107 = arith.constant 8 : index
    %c0_108 = arith.constant 0 : index
    %116 = vector.load %arg7[%c8_107, %c0_108] : memref<72x256xf32, #tpu.memory_space<vmem>>, vector<8x256xf32>
    tpu.vector_store %arg7[%c8_107, %c0_108], %115 {strides = array<i32>} : memref<72x256xf32, #tpu.memory_space<vmem>>, vector<8x256xf32>,
    %c15_i32_109 = arith.constant 15 : i32
    %117 = tpu.dynamic_rotate %106 by %c15_i32_109 dim 1 : vector<8x256xf32>, i32 -> vector<8x256xf32>
    %c2_110 = arith.constant 2 : index
    %c0_111 = arith.constant 0 : index
    %c0_112 = arith.constant 0 : index
    %118 = vector.load %arg2[%c2_110, %c0_111, %c0_112] : memref<8x8x256xf32, #tpu.memory_space<vmem>>, vector<1x8x256xf32>
    %119 = vector.shape_cast %118 : vector<1x8x256xf32> to vector<8x256xf32>
    %120 = arith.mulf %117, %119 : vector<8x256xf32>
    %c16_113 = arith.constant 16 : index
    %c0_114 = arith.constant 0 : index
    %121 = vector.load %arg7[%c16_113, %c0_114] : memref<72x256xf32, #tpu.memory_space<vmem>>, vector<8x256xf32>
    tpu.vector_store %arg7[%c16_113, %c0_114], %120 {strides = array<i32>} : memref<72x256xf32, #tpu.memory_space<vmem>>, vector<8x256xf32>,
    %c1_i32_115 = arith.constant 1 : i32
    %122 = tpu.dynamic_rotate %106 by %c1_i32_115 dim 1 : vector<8x256xf32>, i32 -> vector<8x256xf32>
    %c3_116 = arith.constant 3 : index
    %c0_117 = arith.constant 0 : index
    %c0_118 = arith.constant 0 : index
    %123 = vector.load %arg2[%c3_116, %c0_117, %c0_118] : memref<8x8x256xf32, #tpu.memory_space<vmem>>, vector<1x8x256xf32>
    %124 = vector.shape_cast %123 : vector<1x8x256xf32> to vector<8x256xf32>
    %125 = arith.mulf %122, %124 : vector<8x256xf32>
    %c24_119 = arith.constant 24 : index
    %c0_120 = arith.constant 0 : index
    %126 = vector.load %arg7[%c24_119, %c0_120] : memref<72x256xf32, #tpu.memory_space<vmem>>, vector<8x256xf32>
    tpu.vector_store %arg7[%c24_119, %c0_120], %125 {strides = array<i32>} : memref<72x256xf32, #tpu.memory_space<vmem>>, vector<8x256xf32>,
    %c32_121 = arith.constant 32 : index
    %c0_122 = arith.constant 0 : index
    %127 = vector.load %arg7[%c32_121, %c0_122] : memref<72x256xf32, #tpu.memory_space<vmem>>, vector<8x256xf32>
    tpu.vector_store %arg7[%c32_121, %c0_122], %106 {strides = array<i32>} : memref<72x256xf32, #tpu.memory_space<vmem>>, vector<8x256xf32>,
    %c255_i32_123 = arith.constant 255 : i32
    %128 = tpu.dynamic_rotate %106 by %c255_i32_123 dim 1 : vector<8x256xf32>, i32 -> vector<8x256xf32>
    %c4_124 = arith.constant 4 : index
    %c0_125 = arith.constant 0 : index
    %c0_126 = arith.constant 0 : index
    %129 = vector.load %arg2[%c4_124, %c0_125, %c0_126] : memref<8x8x256xf32, #tpu.memory_space<vmem>>, vector<1x8x256xf32>
    %130 = vector.shape_cast %129 : vector<1x8x256xf32> to vector<8x256xf32>
    %131 = arith.mulf %128, %130 : vector<8x256xf32>
    %c40_127 = arith.constant 40 : index
    %c0_128 = arith.constant 0 : index
    %132 = vector.load %arg7[%c40_127, %c0_128] : memref<72x256xf32, #tpu.memory_space<vmem>>, vector<8x256xf32>
    tpu.vector_store %arg7[%c40_127, %c0_128], %131 {strides = array<i32>} : memref<72x256xf32, #tpu.memory_space<vmem>>, vector<8x256xf32>,
    %c241_i32_129 = arith.constant 241 : i32
    %133 = tpu.dynamic_rotate %106 by %c241_i32_129 dim 1 : vector<8x256xf32>, i32 -> vector<8x256xf32>
    %c5_130 = arith.constant 5 : index
    %c0_131 = arith.constant 0 : index
    %c0_132 = arith.constant 0 : index
    %134 = vector.load %arg2[%c5_130, %c0_131, %c0_132] : memref<8x8x256xf32, #tpu.memory_space<vmem>>, vector<1x8x256xf32>
    %135 = vector.shape_cast %134 : vector<1x8x256xf32> to vector<8x256xf32>
    %136 = arith.mulf %133, %135 : vector<8x256xf32>
    %c48_133 = arith.constant 48 : index
    %c0_134 = arith.constant 0 : index
    %137 = vector.load %arg7[%c48_133, %c0_134] : memref<72x256xf32, #tpu.memory_space<vmem>>, vector<8x256xf32>
    tpu.vector_store %arg7[%c48_133, %c0_134], %136 {strides = array<i32>} : memref<72x256xf32, #tpu.memory_space<vmem>>, vector<8x256xf32>,
    %c240_i32_135 = arith.constant 240 : i32
    %138 = tpu.dynamic_rotate %106 by %c240_i32_135 dim 1 : vector<8x256xf32>, i32 -> vector<8x256xf32>
    %c6_136 = arith.constant 6 : index
    %c0_137 = arith.constant 0 : index
    %c0_138 = arith.constant 0 : index
    %139 = vector.load %arg2[%c6_136, %c0_137, %c0_138] : memref<8x8x256xf32, #tpu.memory_space<vmem>>, vector<1x8x256xf32>
    %140 = vector.shape_cast %139 : vector<1x8x256xf32> to vector<8x256xf32>
    %141 = arith.mulf %138, %140 : vector<8x256xf32>
    %c56_139 = arith.constant 56 : index
    %c0_140 = arith.constant 0 : index
    %142 = vector.load %arg7[%c56_139, %c0_140] : memref<72x256xf32, #tpu.memory_space<vmem>>, vector<8x256xf32>
    tpu.vector_store %arg7[%c56_139, %c0_140], %141 {strides = array<i32>} : memref<72x256xf32, #tpu.memory_space<vmem>>, vector<8x256xf32>,
    %c239_i32_141 = arith.constant 239 : i32
    %143 = tpu.dynamic_rotate %106 by %c239_i32_141 dim 1 : vector<8x256xf32>, i32 -> vector<8x256xf32>
    %c7_142 = arith.constant 7 : index
    %c0_143 = arith.constant 0 : index
    %c0_144 = arith.constant 0 : index
    %144 = vector.load %arg2[%c7_142, %c0_143, %c0_144] : memref<8x8x256xf32, #tpu.memory_space<vmem>>, vector<1x8x256xf32>
    %145 = vector.shape_cast %144 : vector<1x8x256xf32> to vector<8x256xf32>
    %146 = arith.mulf %143, %145 : vector<8x256xf32>
    %c64_145 = arith.constant 64 : index
    %c0_146 = arith.constant 0 : index
    %147 = vector.load %arg7[%c64_145, %c0_146] : memref<72x256xf32, #tpu.memory_space<vmem>>, vector<8x256xf32>
    tpu.vector_store %arg7[%c64_145, %c0_146], %146 {strides = array<i32>} : memref<72x256xf32, #tpu.memory_space<vmem>>, vector<8x256xf32>,
    %c0_147 = arith.constant 0 : index
    %c0_148 = arith.constant 0 : index
    %148 = vector.load %arg7[%c0_147, %c0_148] : memref<72x256xf32, #tpu.memory_space<vmem>>, vector<72x256xf32>
    %149 = arith.truncf %148 : vector<72x256xf32> to vector<72x256xbf16>
    %c2_149 = arith.constant 2 : index
    %c0_150 = arith.constant 0 : index
    %c0_151 = arith.constant 0 : index
    %150 = vector.load %arg3[%c2_149, %c0_150, %c0_151] : memref<6x8x72xbf16, #tpu.memory_space<vmem>>, vector<1x8x72xbf16>
    %151 = vector.shape_cast %150 : vector<1x8x72xbf16> to vector<8x72xbf16>
    %cst_152 = arith.constant dense<0.000000e+00> : vector<8x256xf32>
    %152 = tpu.matmul %151, %149, %cst_152 {dimension_numbers = #tpu.dot_dimension_numbers<[1], [0], [0], [1], [0, 0, 1, 1], [], []>} : vector<8x72xbf16>, vector<72x256xbf16>, vector<8x256xf32> -> vector<8x256xf32>
    %c2_153 = arith.constant 2 : index
    %c0_154 = arith.constant 0 : index
    %c0_155 = arith.constant 0 : index
    %153 = vector.load %arg4[%c2_153, %c0_154, %c0_155] : memref<6x8x1xf32, #tpu.memory_space<vmem>>, vector<1x8x1xf32>
    %154 = vector.shape_cast %153 : vector<1x8x1xf32> to vector<8x1xf32>
    %155 = vector.broadcast %154 : vector<8x1xf32> to vector<8x256xf32>
    %156 = arith.addf %152, %155 : vector<8x256xf32>
    %cst_156 = arith.constant 1.000000e-01 : f32
    %157 = vector.broadcast %cst_156 : f32 to vector<8x256xf32>
    %158 = arith.mulf %157, %156 : vector<8x256xf32>
    %159 = arith.maximumf %156, %158 : vector<8x256xf32>
    %c0_157 = arith.constant 0 : index
    %c0_158 = arith.constant 0 : index
    %160 = vector.load %arg5[%c0_157, %c0_158] : memref<8x256xf32, #tpu.memory_space<vmem>>, vector<8x256xf32>
    tpu.vector_store %arg5[%c0_157, %c0_158], %159 {strides = array<i32>} : memref<8x256xf32, #tpu.memory_space<vmem>>, vector<8x256xf32>,
    %c17_i32_159 = arith.constant 17 : i32
    %161 = tpu.dynamic_rotate %159 by %c17_i32_159 dim 1 : vector<8x256xf32>, i32 -> vector<8x256xf32>
    %c0_160 = arith.constant 0 : index
    %c0_161 = arith.constant 0 : index
    %c0_162 = arith.constant 0 : index
    %162 = vector.load %arg2[%c0_160, %c0_161, %c0_162] : memref<8x8x256xf32, #tpu.memory_space<vmem>>, vector<1x8x256xf32>
    %163 = vector.shape_cast %162 : vector<1x8x256xf32> to vector<8x256xf32>
    %164 = arith.mulf %161, %163 : vector<8x256xf32>
    %c0_163 = arith.constant 0 : index
    %c0_164 = arith.constant 0 : index
    %165 = vector.load %arg7[%c0_163, %c0_164] : memref<72x256xf32, #tpu.memory_space<vmem>>, vector<8x256xf32>
    tpu.vector_store %arg7[%c0_163, %c0_164], %164 {strides = array<i32>} : memref<72x256xf32, #tpu.memory_space<vmem>>, vector<8x256xf32>,
    %c16_i32_165 = arith.constant 16 : i32
    %166 = tpu.dynamic_rotate %159 by %c16_i32_165 dim 1 : vector<8x256xf32>, i32 -> vector<8x256xf32>
    %c1_166 = arith.constant 1 : index
    %c0_167 = arith.constant 0 : index
    %c0_168 = arith.constant 0 : index
    %167 = vector.load %arg2[%c1_166, %c0_167, %c0_168] : memref<8x8x256xf32, #tpu.memory_space<vmem>>, vector<1x8x256xf32>
    %168 = vector.shape_cast %167 : vector<1x8x256xf32> to vector<8x256xf32>
    %169 = arith.mulf %166, %168 : vector<8x256xf32>
    %c8_169 = arith.constant 8 : index
    %c0_170 = arith.constant 0 : index
    %170 = vector.load %arg7[%c8_169, %c0_170] : memref<72x256xf32, #tpu.memory_space<vmem>>, vector<8x256xf32>
    tpu.vector_store %arg7[%c8_169, %c0_170], %169 {strides = array<i32>} : memref<72x256xf32, #tpu.memory_space<vmem>>, vector<8x256xf32>,
    %c15_i32_171 = arith.constant 15 : i32
    %171 = tpu.dynamic_rotate %159 by %c15_i32_171 dim 1 : vector<8x256xf32>, i32 -> vector<8x256xf32>
    %c2_172 = arith.constant 2 : index
    %c0_173 = arith.constant 0 : index
    %c0_174 = arith.constant 0 : index
    %172 = vector.load %arg2[%c2_172, %c0_173, %c0_174] : memref<8x8x256xf32, #tpu.memory_space<vmem>>, vector<1x8x256xf32>
    %173 = vector.shape_cast %172 : vector<1x8x256xf32> to vector<8x256xf32>
    %174 = arith.mulf %171, %173 : vector<8x256xf32>
    %c16_175 = arith.constant 16 : index
    %c0_176 = arith.constant 0 : index
    %175 = vector.load %arg7[%c16_175, %c0_176] : memref<72x256xf32, #tpu.memory_space<vmem>>, vector<8x256xf32>
    tpu.vector_store %arg7[%c16_175, %c0_176], %174 {strides = array<i32>} : memref<72x256xf32, #tpu.memory_space<vmem>>, vector<8x256xf32>,
    %c1_i32_177 = arith.constant 1 : i32
    %176 = tpu.dynamic_rotate %159 by %c1_i32_177 dim 1 : vector<8x256xf32>, i32 -> vector<8x256xf32>
    %c3_178 = arith.constant 3 : index
    %c0_179 = arith.constant 0 : index
    %c0_180 = arith.constant 0 : index
    %177 = vector.load %arg2[%c3_178, %c0_179, %c0_180] : memref<8x8x256xf32, #tpu.memory_space<vmem>>, vector<1x8x256xf32>
    %178 = vector.shape_cast %177 : vector<1x8x256xf32> to vector<8x256xf32>
    %179 = arith.mulf %176, %178 : vector<8x256xf32>
    %c24_181 = arith.constant 24 : index
    %c0_182 = arith.constant 0 : index
    %180 = vector.load %arg7[%c24_181, %c0_182] : memref<72x256xf32, #tpu.memory_space<vmem>>, vector<8x256xf32>
    tpu.vector_store %arg7[%c24_181, %c0_182], %179 {strides = array<i32>} : memref<72x256xf32, #tpu.memory_space<vmem>>, vector<8x256xf32>,
    %c32_183 = arith.constant 32 : index
    %c0_184 = arith.constant 0 : index
    %181 = vector.load %arg7[%c32_183, %c0_184] : memref<72x256xf32, #tpu.memory_space<vmem>>, vector<8x256xf32>
    tpu.vector_store %arg7[%c32_183, %c0_184], %159 {strides = array<i32>} : memref<72x256xf32, #tpu.memory_space<vmem>>, vector<8x256xf32>,
    %c255_i32_185 = arith.constant 255 : i32
    %182 = tpu.dynamic_rotate %159 by %c255_i32_185 dim 1 : vector<8x256xf32>, i32 -> vector<8x256xf32>
    %c4_186 = arith.constant 4 : index
    %c0_187 = arith.constant 0 : index
    %c0_188 = arith.constant 0 : index
    %183 = vector.load %arg2[%c4_186, %c0_187, %c0_188] : memref<8x8x256xf32, #tpu.memory_space<vmem>>, vector<1x8x256xf32>
    %184 = vector.shape_cast %183 : vector<1x8x256xf32> to vector<8x256xf32>
    %185 = arith.mulf %182, %184 : vector<8x256xf32>
    %c40_189 = arith.constant 40 : index
    %c0_190 = arith.constant 0 : index
    %186 = vector.load %arg7[%c40_189, %c0_190] : memref<72x256xf32, #tpu.memory_space<vmem>>, vector<8x256xf32>
    tpu.vector_store %arg7[%c40_189, %c0_190], %185 {strides = array<i32>} : memref<72x256xf32, #tpu.memory_space<vmem>>, vector<8x256xf32>,
    %c241_i32_191 = arith.constant 241 : i32
    %187 = tpu.dynamic_rotate %159 by %c241_i32_191 dim 1 : vector<8x256xf32>, i32 -> vector<8x256xf32>
    %c5_192 = arith.constant 5 : index
    %c0_193 = arith.constant 0 : index
    %c0_194 = arith.constant 0 : index
    %188 = vector.load %arg2[%c5_192, %c0_193, %c0_194] : memref<8x8x256xf32, #tpu.memory_space<vmem>>, vector<1x8x256xf32>
    %189 = vector.shape_cast %188 : vector<1x8x256xf32> to vector<8x256xf32>
    %190 = arith.mulf %187, %189 : vector<8x256xf32>
    %c48_195 = arith.constant 48 : index
    %c0_196 = arith.constant 0 : index
    %191 = vector.load %arg7[%c48_195, %c0_196] : memref<72x256xf32, #tpu.memory_space<vmem>>, vector<8x256xf32>
    tpu.vector_store %arg7[%c48_195, %c0_196], %190 {strides = array<i32>} : memref<72x256xf32, #tpu.memory_space<vmem>>, vector<8x256xf32>,
    %c240_i32_197 = arith.constant 240 : i32
    %192 = tpu.dynamic_rotate %159 by %c240_i32_197 dim 1 : vector<8x256xf32>, i32 -> vector<8x256xf32>
    %c6_198 = arith.constant 6 : index
    %c0_199 = arith.constant 0 : index
    %c0_200 = arith.constant 0 : index
    %193 = vector.load %arg2[%c6_198, %c0_199, %c0_200] : memref<8x8x256xf32, #tpu.memory_space<vmem>>, vector<1x8x256xf32>
    %194 = vector.shape_cast %193 : vector<1x8x256xf32> to vector<8x256xf32>
    %195 = arith.mulf %192, %194 : vector<8x256xf32>
    %c56_201 = arith.constant 56 : index
    %c0_202 = arith.constant 0 : index
    %196 = vector.load %arg7[%c56_201, %c0_202] : memref<72x256xf32, #tpu.memory_space<vmem>>, vector<8x256xf32>
    tpu.vector_store %arg7[%c56_201, %c0_202], %195 {strides = array<i32>} : memref<72x256xf32, #tpu.memory_space<vmem>>, vector<8x256xf32>,
    %c239_i32_203 = arith.constant 239 : i32
    %197 = tpu.dynamic_rotate %159 by %c239_i32_203 dim 1 : vector<8x256xf32>, i32 -> vector<8x256xf32>
    %c7_204 = arith.constant 7 : index
    %c0_205 = arith.constant 0 : index
    %c0_206 = arith.constant 0 : index
    %198 = vector.load %arg2[%c7_204, %c0_205, %c0_206] : memref<8x8x256xf32, #tpu.memory_space<vmem>>, vector<1x8x256xf32>
    %199 = vector.shape_cast %198 : vector<1x8x256xf32> to vector<8x256xf32>
    %200 = arith.mulf %197, %199 : vector<8x256xf32>
    %c64_207 = arith.constant 64 : index
    %c0_208 = arith.constant 0 : index
    %201 = vector.load %arg7[%c64_207, %c0_208] : memref<72x256xf32, #tpu.memory_space<vmem>>, vector<8x256xf32>
    tpu.vector_store %arg7[%c64_207, %c0_208], %200 {strides = array<i32>} : memref<72x256xf32, #tpu.memory_space<vmem>>, vector<8x256xf32>,
    %c0_209 = arith.constant 0 : index
    %c0_210 = arith.constant 0 : index
    %202 = vector.load %arg7[%c0_209, %c0_210] : memref<72x256xf32, #tpu.memory_space<vmem>>, vector<72x256xf32>
    %203 = arith.truncf %202 : vector<72x256xf32> to vector<72x256xbf16>
    %c3_211 = arith.constant 3 : index
    %c0_212 = arith.constant 0 : index
    %c0_213 = arith.constant 0 : index
    %204 = vector.load %arg3[%c3_211, %c0_212, %c0_213] : memref<6x8x72xbf16, #tpu.memory_space<vmem>>, vector<1x8x72xbf16>
    %205 = vector.shape_cast %204 : vector<1x8x72xbf16> to vector<8x72xbf16>
    %cst_214 = arith.constant dense<0.000000e+00> : vector<8x256xf32>
    %206 = tpu.matmul %205, %203, %cst_214 {dimension_numbers = #tpu.dot_dimension_numbers<[1], [0], [0], [1], [0, 0, 1, 1], [], []>} : vector<8x72xbf16>, vector<72x256xbf16>, vector<8x256xf32> -> vector<8x256xf32>
    %c3_215 = arith.constant 3 : index
    %c0_216 = arith.constant 0 : index
    %c0_217 = arith.constant 0 : index
    %207 = vector.load %arg4[%c3_215, %c0_216, %c0_217] : memref<6x8x1xf32, #tpu.memory_space<vmem>>, vector<1x8x1xf32>
    %208 = vector.shape_cast %207 : vector<1x8x1xf32> to vector<8x1xf32>
    %209 = vector.broadcast %208 : vector<8x1xf32> to vector<8x256xf32>
    %210 = arith.addf %206, %209 : vector<8x256xf32>
    %cst_218 = arith.constant 1.000000e-01 : f32
    %211 = vector.broadcast %cst_218 : f32 to vector<8x256xf32>
    %212 = arith.mulf %211, %210 : vector<8x256xf32>
    %213 = arith.maximumf %210, %212 : vector<8x256xf32>
    %c17_i32_219 = arith.constant 17 : i32
    %214 = tpu.dynamic_rotate %213 by %c17_i32_219 dim 1 : vector<8x256xf32>, i32 -> vector<8x256xf32>
    %c0_220 = arith.constant 0 : index
    %c0_221 = arith.constant 0 : index
    %c0_222 = arith.constant 0 : index
    %215 = vector.load %arg2[%c0_220, %c0_221, %c0_222] : memref<8x8x256xf32, #tpu.memory_space<vmem>>, vector<1x8x256xf32>
    %216 = vector.shape_cast %215 : vector<1x8x256xf32> to vector<8x256xf32>
    %217 = arith.mulf %214, %216 : vector<8x256xf32>
    %c0_223 = arith.constant 0 : index
    %c0_224 = arith.constant 0 : index
    %218 = vector.load %arg7[%c0_223, %c0_224] : memref<72x256xf32, #tpu.memory_space<vmem>>, vector<8x256xf32>
    tpu.vector_store %arg7[%c0_223, %c0_224], %217 {strides = array<i32>} : memref<72x256xf32, #tpu.memory_space<vmem>>, vector<8x256xf32>,
    %c16_i32_225 = arith.constant 16 : i32
    %219 = tpu.dynamic_rotate %213 by %c16_i32_225 dim 1 : vector<8x256xf32>, i32 -> vector<8x256xf32>
    %c1_226 = arith.constant 1 : index
    %c0_227 = arith.constant 0 : index
    %c0_228 = arith.constant 0 : index
    %220 = vector.load %arg2[%c1_226, %c0_227, %c0_228] : memref<8x8x256xf32, #tpu.memory_space<vmem>>, vector<1x8x256xf32>
    %221 = vector.shape_cast %220 : vector<1x8x256xf32> to vector<8x256xf32>
    %222 = arith.mulf %219, %221 : vector<8x256xf32>
    %c8_229 = arith.constant 8 : index
    %c0_230 = arith.constant 0 : index
    %223 = vector.load %arg7[%c8_229, %c0_230] : memref<72x256xf32, #tpu.memory_space<vmem>>, vector<8x256xf32>
    tpu.vector_store %arg7[%c8_229, %c0_230], %222 {strides = array<i32>} : memref<72x256xf32, #tpu.memory_space<vmem>>, vector<8x256xf32>,
    %c15_i32_231 = arith.constant 15 : i32
    %224 = tpu.dynamic_rotate %213 by %c15_i32_231 dim 1 : vector<8x256xf32>, i32 -> vector<8x256xf32>
    %c2_232 = arith.constant 2 : index
    %c0_233 = arith.constant 0 : index
    %c0_234 = arith.constant 0 : index
    %225 = vector.load %arg2[%c2_232, %c0_233, %c0_234] : memref<8x8x256xf32, #tpu.memory_space<vmem>>, vector<1x8x256xf32>
    %226 = vector.shape_cast %225 : vector<1x8x256xf32> to vector<8x256xf32>
    %227 = arith.mulf %224, %226 : vector<8x256xf32>
    %c16_235 = arith.constant 16 : index
    %c0_236 = arith.constant 0 : index
    %228 = vector.load %arg7[%c16_235, %c0_236] : memref<72x256xf32, #tpu.memory_space<vmem>>, vector<8x256xf32>
    tpu.vector_store %arg7[%c16_235, %c0_236], %227 {strides = array<i32>} : memref<72x256xf32, #tpu.memory_space<vmem>>, vector<8x256xf32>,
    %c1_i32_237 = arith.constant 1 : i32
    %229 = tpu.dynamic_rotate %213 by %c1_i32_237 dim 1 : vector<8x256xf32>, i32 -> vector<8x256xf32>
    %c3_238 = arith.constant 3 : index
    %c0_239 = arith.constant 0 : index
    %c0_240 = arith.constant 0 : index
    %230 = vector.load %arg2[%c3_238, %c0_239, %c0_240] : memref<8x8x256xf32, #tpu.memory_space<vmem>>, vector<1x8x256xf32>
    %231 = vector.shape_cast %230 : vector<1x8x256xf32> to vector<8x256xf32>
    %232 = arith.mulf %229, %231 : vector<8x256xf32>
    %c24_241 = arith.constant 24 : index
    %c0_242 = arith.constant 0 : index
    %233 = vector.load %arg7[%c24_241, %c0_242] : memref<72x256xf32, #tpu.memory_space<vmem>>, vector<8x256xf32>
    tpu.vector_store %arg7[%c24_241, %c0_242], %232 {strides = array<i32>} : memref<72x256xf32, #tpu.memory_space<vmem>>, vector<8x256xf32>,
    %c32_243 = arith.constant 32 : index
    %c0_244 = arith.constant 0 : index
    %234 = vector.load %arg7[%c32_243, %c0_244] : memref<72x256xf32, #tpu.memory_space<vmem>>, vector<8x256xf32>
    tpu.vector_store %arg7[%c32_243, %c0_244], %213 {strides = array<i32>} : memref<72x256xf32, #tpu.memory_space<vmem>>, vector<8x256xf32>,
    %c255_i32_245 = arith.constant 255 : i32
    %235 = tpu.dynamic_rotate %213 by %c255_i32_245 dim 1 : vector<8x256xf32>, i32 -> vector<8x256xf32>
    %c4_246 = arith.constant 4 : index
    %c0_247 = arith.constant 0 : index
    %c0_248 = arith.constant 0 : index
    %236 = vector.load %arg2[%c4_246, %c0_247, %c0_248] : memref<8x8x256xf32, #tpu.memory_space<vmem>>, vector<1x8x256xf32>
    %237 = vector.shape_cast %236 : vector<1x8x256xf32> to vector<8x256xf32>
    %238 = arith.mulf %235, %237 : vector<8x256xf32>
    %c40_249 = arith.constant 40 : index
    %c0_250 = arith.constant 0 : index
    %239 = vector.load %arg7[%c40_249, %c0_250] : memref<72x256xf32, #tpu.memory_space<vmem>>, vector<8x256xf32>
    tpu.vector_store %arg7[%c40_249, %c0_250], %238 {strides = array<i32>} : memref<72x256xf32, #tpu.memory_space<vmem>>, vector<8x256xf32>,
    %c241_i32_251 = arith.constant 241 : i32
    %240 = tpu.dynamic_rotate %213 by %c241_i32_251 dim 1 : vector<8x256xf32>, i32 -> vector<8x256xf32>
    %c5_252 = arith.constant 5 : index
    %c0_253 = arith.constant 0 : index
    %c0_254 = arith.constant 0 : index
    %241 = vector.load %arg2[%c5_252, %c0_253, %c0_254] : memref<8x8x256xf32, #tpu.memory_space<vmem>>, vector<1x8x256xf32>
    %242 = vector.shape_cast %241 : vector<1x8x256xf32> to vector<8x256xf32>
    %243 = arith.mulf %240, %242 : vector<8x256xf32>
    %c48_255 = arith.constant 48 : index
    %c0_256 = arith.constant 0 : index
    %244 = vector.load %arg7[%c48_255, %c0_256] : memref<72x256xf32, #tpu.memory_space<vmem>>, vector<8x256xf32>
    tpu.vector_store %arg7[%c48_255, %c0_256], %243 {strides = array<i32>} : memref<72x256xf32, #tpu.memory_space<vmem>>, vector<8x256xf32>,
    %c240_i32_257 = arith.constant 240 : i32
    %245 = tpu.dynamic_rotate %213 by %c240_i32_257 dim 1 : vector<8x256xf32>, i32 -> vector<8x256xf32>
    %c6_258 = arith.constant 6 : index
    %c0_259 = arith.constant 0 : index
    %c0_260 = arith.constant 0 : index
    %246 = vector.load %arg2[%c6_258, %c0_259, %c0_260] : memref<8x8x256xf32, #tpu.memory_space<vmem>>, vector<1x8x256xf32>
    %247 = vector.shape_cast %246 : vector<1x8x256xf32> to vector<8x256xf32>
    %248 = arith.mulf %245, %247 : vector<8x256xf32>
    %c56_261 = arith.constant 56 : index
    %c0_262 = arith.constant 0 : index
    %249 = vector.load %arg7[%c56_261, %c0_262] : memref<72x256xf32, #tpu.memory_space<vmem>>, vector<8x256xf32>
    tpu.vector_store %arg7[%c56_261, %c0_262], %248 {strides = array<i32>} : memref<72x256xf32, #tpu.memory_space<vmem>>, vector<8x256xf32>,
    %c239_i32_263 = arith.constant 239 : i32
    %250 = tpu.dynamic_rotate %213 by %c239_i32_263 dim 1 : vector<8x256xf32>, i32 -> vector<8x256xf32>
    %c7_264 = arith.constant 7 : index
    %c0_265 = arith.constant 0 : index
    %c0_266 = arith.constant 0 : index
    %251 = vector.load %arg2[%c7_264, %c0_265, %c0_266] : memref<8x8x256xf32, #tpu.memory_space<vmem>>, vector<1x8x256xf32>
    %252 = vector.shape_cast %251 : vector<1x8x256xf32> to vector<8x256xf32>
    %253 = arith.mulf %250, %252 : vector<8x256xf32>
    %c64_267 = arith.constant 64 : index
    %c0_268 = arith.constant 0 : index
    %254 = vector.load %arg7[%c64_267, %c0_268] : memref<72x256xf32, #tpu.memory_space<vmem>>, vector<8x256xf32>
    tpu.vector_store %arg7[%c64_267, %c0_268], %253 {strides = array<i32>} : memref<72x256xf32, #tpu.memory_space<vmem>>, vector<8x256xf32>,
    %c0_269 = arith.constant 0 : index
    %c0_270 = arith.constant 0 : index
    %255 = vector.load %arg7[%c0_269, %c0_270] : memref<72x256xf32, #tpu.memory_space<vmem>>, vector<72x256xf32>
    %256 = arith.truncf %255 : vector<72x256xf32> to vector<72x256xbf16>
    %c4_271 = arith.constant 4 : index
    %c0_272 = arith.constant 0 : index
    %c0_273 = arith.constant 0 : index
    %257 = vector.load %arg3[%c4_271, %c0_272, %c0_273] : memref<6x8x72xbf16, #tpu.memory_space<vmem>>, vector<1x8x72xbf16>
    %258 = vector.shape_cast %257 : vector<1x8x72xbf16> to vector<8x72xbf16>
    %cst_274 = arith.constant dense<0.000000e+00> : vector<8x256xf32>
    %259 = tpu.matmul %258, %256, %cst_274 {dimension_numbers = #tpu.dot_dimension_numbers<[1], [0], [0], [1], [0, 0, 1, 1], [], []>} : vector<8x72xbf16>, vector<72x256xbf16>, vector<8x256xf32> -> vector<8x256xf32>
    %c4_275 = arith.constant 4 : index
    %c0_276 = arith.constant 0 : index
    %c0_277 = arith.constant 0 : index
    %260 = vector.load %arg4[%c4_275, %c0_276, %c0_277] : memref<6x8x1xf32, #tpu.memory_space<vmem>>, vector<1x8x1xf32>
    %261 = vector.shape_cast %260 : vector<1x8x1xf32> to vector<8x1xf32>
    %262 = vector.broadcast %261 : vector<8x1xf32> to vector<8x256xf32>
    %263 = arith.addf %259, %262 : vector<8x256xf32>
    %cst_278 = arith.constant 1.000000e-01 : f32
    %264 = vector.broadcast %cst_278 : f32 to vector<8x256xf32>
    %265 = arith.mulf %264, %263 : vector<8x256xf32>
    %266 = arith.maximumf %263, %265 : vector<8x256xf32>
    %c17_i32_279 = arith.constant 17 : i32
    %267 = tpu.dynamic_rotate %266 by %c17_i32_279 dim 1 : vector<8x256xf32>, i32 -> vector<8x256xf32>
    %c0_280 = arith.constant 0 : index
    %c0_281 = arith.constant 0 : index
    %c0_282 = arith.constant 0 : index
    %268 = vector.load %arg2[%c0_280, %c0_281, %c0_282] : memref<8x8x256xf32, #tpu.memory_space<vmem>>, vector<1x8x256xf32>
    %269 = vector.shape_cast %268 : vector<1x8x256xf32> to vector<8x256xf32>
    %270 = arith.mulf %267, %269 : vector<8x256xf32>
    %c0_283 = arith.constant 0 : index
    %c0_284 = arith.constant 0 : index
    %271 = vector.load %arg7[%c0_283, %c0_284] : memref<72x256xf32, #tpu.memory_space<vmem>>, vector<8x256xf32>
    tpu.vector_store %arg7[%c0_283, %c0_284], %270 {strides = array<i32>} : memref<72x256xf32, #tpu.memory_space<vmem>>, vector<8x256xf32>,
    %c16_i32_285 = arith.constant 16 : i32
    %272 = tpu.dynamic_rotate %266 by %c16_i32_285 dim 1 : vector<8x256xf32>, i32 -> vector<8x256xf32>
    %c1_286 = arith.constant 1 : index
    %c0_287 = arith.constant 0 : index
    %c0_288 = arith.constant 0 : index
    %273 = vector.load %arg2[%c1_286, %c0_287, %c0_288] : memref<8x8x256xf32, #tpu.memory_space<vmem>>, vector<1x8x256xf32>
    %274 = vector.shape_cast %273 : vector<1x8x256xf32> to vector<8x256xf32>
    %275 = arith.mulf %272, %274 : vector<8x256xf32>
    %c8_289 = arith.constant 8 : index
    %c0_290 = arith.constant 0 : index
    %276 = vector.load %arg7[%c8_289, %c0_290] : memref<72x256xf32, #tpu.memory_space<vmem>>, vector<8x256xf32>
    tpu.vector_store %arg7[%c8_289, %c0_290], %275 {strides = array<i32>} : memref<72x256xf32, #tpu.memory_space<vmem>>, vector<8x256xf32>,
    %c15_i32_291 = arith.constant 15 : i32
    %277 = tpu.dynamic_rotate %266 by %c15_i32_291 dim 1 : vector<8x256xf32>, i32 -> vector<8x256xf32>
    %c2_292 = arith.constant 2 : index
    %c0_293 = arith.constant 0 : index
    %c0_294 = arith.constant 0 : index
    %278 = vector.load %arg2[%c2_292, %c0_293, %c0_294] : memref<8x8x256xf32, #tpu.memory_space<vmem>>, vector<1x8x256xf32>
    %279 = vector.shape_cast %278 : vector<1x8x256xf32> to vector<8x256xf32>
    %280 = arith.mulf %277, %279 : vector<8x256xf32>
    %c16_295 = arith.constant 16 : index
    %c0_296 = arith.constant 0 : index
    %281 = vector.load %arg7[%c16_295, %c0_296] : memref<72x256xf32, #tpu.memory_space<vmem>>, vector<8x256xf32>
    tpu.vector_store %arg7[%c16_295, %c0_296], %280 {strides = array<i32>} : memref<72x256xf32, #tpu.memory_space<vmem>>, vector<8x256xf32>,
    %c1_i32_297 = arith.constant 1 : i32
    %282 = tpu.dynamic_rotate %266 by %c1_i32_297 dim 1 : vector<8x256xf32>, i32 -> vector<8x256xf32>
    %c3_298 = arith.constant 3 : index
    %c0_299 = arith.constant 0 : index
    %c0_300 = arith.constant 0 : index
    %283 = vector.load %arg2[%c3_298, %c0_299, %c0_300] : memref<8x8x256xf32, #tpu.memory_space<vmem>>, vector<1x8x256xf32>
    %284 = vector.shape_cast %283 : vector<1x8x256xf32> to vector<8x256xf32>
    %285 = arith.mulf %282, %284 : vector<8x256xf32>
    %c24_301 = arith.constant 24 : index
    %c0_302 = arith.constant 0 : index
    %286 = vector.load %arg7[%c24_301, %c0_302] : memref<72x256xf32, #tpu.memory_space<vmem>>, vector<8x256xf32>
    tpu.vector_store %arg7[%c24_301, %c0_302], %285 {strides = array<i32>} : memref<72x256xf32, #tpu.memory_space<vmem>>, vector<8x256xf32>,
    %c32_303 = arith.constant 32 : index
    %c0_304 = arith.constant 0 : index
    %287 = vector.load %arg7[%c32_303, %c0_304] : memref<72x256xf32, #tpu.memory_space<vmem>>, vector<8x256xf32>
    tpu.vector_store %arg7[%c32_303, %c0_304], %266 {strides = array<i32>} : memref<72x256xf32, #tpu.memory_space<vmem>>, vector<8x256xf32>,
    %c255_i32_305 = arith.constant 255 : i32
    %288 = tpu.dynamic_rotate %266 by %c255_i32_305 dim 1 : vector<8x256xf32>, i32 -> vector<8x256xf32>
    %c4_306 = arith.constant 4 : index
    %c0_307 = arith.constant 0 : index
    %c0_308 = arith.constant 0 : index
    %289 = vector.load %arg2[%c4_306, %c0_307, %c0_308] : memref<8x8x256xf32, #tpu.memory_space<vmem>>, vector<1x8x256xf32>
    %290 = vector.shape_cast %289 : vector<1x8x256xf32> to vector<8x256xf32>
    %291 = arith.mulf %288, %290 : vector<8x256xf32>
    %c40_309 = arith.constant 40 : index
    %c0_310 = arith.constant 0 : index
    %292 = vector.load %arg7[%c40_309, %c0_310] : memref<72x256xf32, #tpu.memory_space<vmem>>, vector<8x256xf32>
    tpu.vector_store %arg7[%c40_309, %c0_310], %291 {strides = array<i32>} : memref<72x256xf32, #tpu.memory_space<vmem>>, vector<8x256xf32>,
    %c241_i32_311 = arith.constant 241 : i32
    %293 = tpu.dynamic_rotate %266 by %c241_i32_311 dim 1 : vector<8x256xf32>, i32 -> vector<8x256xf32>
    %c5_312 = arith.constant 5 : index
    %c0_313 = arith.constant 0 : index
    %c0_314 = arith.constant 0 : index
    %294 = vector.load %arg2[%c5_312, %c0_313, %c0_314] : memref<8x8x256xf32, #tpu.memory_space<vmem>>, vector<1x8x256xf32>
    %295 = vector.shape_cast %294 : vector<1x8x256xf32> to vector<8x256xf32>
    %296 = arith.mulf %293, %295 : vector<8x256xf32>
    %c48_315 = arith.constant 48 : index
    %c0_316 = arith.constant 0 : index
    %297 = vector.load %arg7[%c48_315, %c0_316] : memref<72x256xf32, #tpu.memory_space<vmem>>, vector<8x256xf32>
    tpu.vector_store %arg7[%c48_315, %c0_316], %296 {strides = array<i32>} : memref<72x256xf32, #tpu.memory_space<vmem>>, vector<8x256xf32>,
    %c240_i32_317 = arith.constant 240 : i32
    %298 = tpu.dynamic_rotate %266 by %c240_i32_317 dim 1 : vector<8x256xf32>, i32 -> vector<8x256xf32>
    %c6_318 = arith.constant 6 : index
    %c0_319 = arith.constant 0 : index
    %c0_320 = arith.constant 0 : index
    %299 = vector.load %arg2[%c6_318, %c0_319, %c0_320] : memref<8x8x256xf32, #tpu.memory_space<vmem>>, vector<1x8x256xf32>
    %300 = vector.shape_cast %299 : vector<1x8x256xf32> to vector<8x256xf32>
    %301 = arith.mulf %298, %300 : vector<8x256xf32>
    %c56_321 = arith.constant 56 : index
    %c0_322 = arith.constant 0 : index
    %302 = vector.load %arg7[%c56_321, %c0_322] : memref<72x256xf32, #tpu.memory_space<vmem>>, vector<8x256xf32>
    tpu.vector_store %arg7[%c56_321, %c0_322], %301 {strides = array<i32>} : memref<72x256xf32, #tpu.memory_space<vmem>>, vector<8x256xf32>,
    %c239_i32_323 = arith.constant 239 : i32
    %303 = tpu.dynamic_rotate %266 by %c239_i32_323 dim 1 : vector<8x256xf32>, i32 -> vector<8x256xf32>
    %c7_324 = arith.constant 7 : index
    %c0_325 = arith.constant 0 : index
    %c0_326 = arith.constant 0 : index
    %304 = vector.load %arg2[%c7_324, %c0_325, %c0_326] : memref<8x8x256xf32, #tpu.memory_space<vmem>>, vector<1x8x256xf32>
    %305 = vector.shape_cast %304 : vector<1x8x256xf32> to vector<8x256xf32>
    %306 = arith.mulf %303, %305 : vector<8x256xf32>
    %c64_327 = arith.constant 64 : index
    %c0_328 = arith.constant 0 : index
    %307 = vector.load %arg7[%c64_327, %c0_328] : memref<72x256xf32, #tpu.memory_space<vmem>>, vector<8x256xf32>
    tpu.vector_store %arg7[%c64_327, %c0_328], %306 {strides = array<i32>} : memref<72x256xf32, #tpu.memory_space<vmem>>, vector<8x256xf32>,
    %c0_329 = arith.constant 0 : index
    %c0_330 = arith.constant 0 : index
    %308 = vector.load %arg7[%c0_329, %c0_330] : memref<72x256xf32, #tpu.memory_space<vmem>>, vector<72x256xf32>
    %309 = arith.truncf %308 : vector<72x256xf32> to vector<72x256xbf16>
    %c5_331 = arith.constant 5 : index
    %c0_332 = arith.constant 0 : index
    %c0_333 = arith.constant 0 : index
    %310 = vector.load %arg3[%c5_331, %c0_332, %c0_333] : memref<6x8x72xbf16, #tpu.memory_space<vmem>>, vector<1x8x72xbf16>
    %311 = vector.shape_cast %310 : vector<1x8x72xbf16> to vector<8x72xbf16>
    %cst_334 = arith.constant dense<0.000000e+00> : vector<8x256xf32>
    %312 = tpu.matmul %311, %309, %cst_334 {dimension_numbers = #tpu.dot_dimension_numbers<[1], [0], [0], [1], [0, 0, 1, 1], [], []>} : vector<8x72xbf16>, vector<72x256xbf16>, vector<8x256xf32> -> vector<8x256xf32>
    %c5_335 = arith.constant 5 : index
    %c0_336 = arith.constant 0 : index
    %c0_337 = arith.constant 0 : index
    %313 = vector.load %arg4[%c5_335, %c0_336, %c0_337] : memref<6x8x1xf32, #tpu.memory_space<vmem>>, vector<1x8x1xf32>
    %314 = vector.shape_cast %313 : vector<1x8x1xf32> to vector<8x1xf32>
    %315 = vector.broadcast %314 : vector<8x1xf32> to vector<8x256xf32>
    %316 = arith.addf %312, %315 : vector<8x256xf32>
    %cst_338 = arith.constant 1.000000e-01 : f32
    %317 = vector.broadcast %cst_338 : f32 to vector<8x256xf32>
    %318 = arith.mulf %317, %316 : vector<8x256xf32>
    %319 = arith.maximumf %316, %318 : vector<8x256xf32>
    %c0_339 = arith.constant 0 : index
    %c0_340 = arith.constant 0 : index
    %320 = vector.load %arg6[%c0_339, %c0_340] : memref<8x256xf32, #tpu.memory_space<vmem>>, vector<8x256xf32>
    tpu.vector_store %arg6[%c0_339, %c0_340], %319 {strides = array<i32>} : memref<8x256xf32, #tpu.memory_space<vmem>>, vector<8x256xf32>,
    return
  }
  func.func @transform_0(%arg0: i32) -> (i32, i32) {
    %c0_i32 = arith.constant 0 : i32
    %c0_i32_0 = arith.constant 0 : i32
    return %c0_i32, %arg0 : i32, i32
  }
  func.func @transform_1(%arg0: i32) -> (i32, i32, i32) {
    %c0_i32 = arith.constant 0 : i32
    %c0_i32_0 = arith.constant 0 : i32
    %c0_i32_1 = arith.constant 0 : i32
    %c0_i32_2 = arith.constant 0 : i32
    return %c0_i32, %c0_i32_0, %c0_i32_1 : i32, i32, i32
  }
  func.func @transform_2(%arg0: i32) -> (i32, i32, i32) {
    %c0_i32 = arith.constant 0 : i32
    %c0_i32_0 = arith.constant 0 : i32
    %c0_i32_1 = arith.constant 0 : i32
    %c0_i32_2 = arith.constant 0 : i32
    return %c0_i32, %c0_i32_0, %c0_i32_1 : i32, i32, i32
  }
  func.func @transform_3(%arg0: i32) -> (i32, i32, i32) {
    %c0_i32 = arith.constant 0 : i32
    %c0_i32_0 = arith.constant 0 : i32
    %c0_i32_1 = arith.constant 0 : i32
    %c0_i32_2 = arith.constant 0 : i32
    return %c0_i32, %c0_i32_0, %c0_i32_1 : i32, i32, i32
  }
  func.func @transform_4(%arg0: i32) -> (i32, i32) {
    %c0_i32 = arith.constant 0 : i32
    %c0_i32_0 = arith.constant 0 : i32
    return %c0_i32, %arg0 : i32, i32
  }
  func.func @transform_5(%arg0: i32) -> (i32, i32) {
    %c0_i32 = arith.constant 0 : i32
    %c0_i32_0 = arith.constant 0 : i32
    return %c0_i32, %arg0 : i32, i32
  }
}

</mosaic_0001>

<bundles_post_ra>
// kernel: paraphraser_forward.1
= control target key start
LH: loop header
LB: loop body
LE: loop exit
PB: predicated region body
PF: predicated region fallthrough
CT: control target
= control target key end

     0   :  { %s1675_s18 = smov 0   ;;  %s2369_s0 = inlined_call_operand.vmem [shape: f32[8,512], index: 0, kind: input, shape index: {}]   ;;  %s2370_s1 = inlined_call_operand.vmem [shape: f32[8,8,256], index: 1, kind: input, shape index: {}]   ;;  %s2371_s2 = inlined_call_operand.vmem [shape: bf16[6,8,72], index: 2, kind: input, shape index: {}]   ;;  %s2372_s3 = inlined_call_operand.vmem [shape: f32[6,8,1], index: 3, kind: input, shape index: {}]   ;;  %s2373_s4 = inlined_call_operand.vmem [shape: f32[8,512], index: 4, kind: output, shape index: {0}]   ;;  %s2374_s5 = inlined_call_operand.vmem [shape: f32[8,512], index: 5, kind: output, shape index: {1}]  }
   0x1 LB: > { %s1490_s19 = sadd.s32 4294967295, %s1634_s18   ;;  %p1494_p0 = scmp.ge.s32.totalorder %s1634_s18, 1  ;;  %s1634_s18 = sphi %s1675_s18, %s16_s18  }
   0x2   : > { %p191_p1 = scmp.lt.s32.totalorder %s1634_s18, 3 }
   0x4   : > { %p192_p2 = pnand %p1494_p0, %p191_p1 }
   0x5   : > { %s1495_s20 = sshll.u32 (!%p192_p2), %s1490_s19, 1  ;;  %s1636_s25 = smov (!%p192_p2), 16   ;;  %v1642_v2 = vmov (!%p192_p2), 0   ;;  %v389_v3 = vld [vmem:[%s2372_s3] sm:$0xff] (!%p192_p2)  ;;  %v249_v4 = vlaneseq (!%p192_p2)  ;;  %v1739_v8 = vld [vmem:[%s2370_s1 + $0x8] sm:$0xff] (!%p192_p2)  ;;  %v1744_v9 = vld [vmem:[%s2370_s1 + $0x18] sm:$0xff] (!%p192_p2) }
   0x6   : > { %195 = sbr.rel (%p192_p2) target bundleno = 2247 (0x8c7), region = 36  ;;  %p225_p3 = scmp.lt.s32.totalorder (!%p192_p2), %s1495_s20, 3  ;;  %438 = vmatprep.mubr.bf16.mxu0 (!%p192_p2), %v1642_v2  ;;  %1626 = vset.pattern.permute.xlu0 (!%p192_p2), %v1642_v2  ;;  %v1749_v10 = vld [vmem:[%s2370_s1] sm:$0xff] (!%p192_p2)  ;;  %v1754_v11 = vld [vmem:[%s2370_s1 + $0x10] sm:$0xff] (!%p192_p2)  ;;  %v1778_v27 = vld [vmem:[%s2370_s1 + $0x28] sm:$0xff] (!%p192_p2)  ;;  %vm399_vm8 = vcmask (!%p192_p2), 1043456  }
   0x7   : > { %s1637_s26 = smov (!%p192_p2), 17   ;;  %s1638_s27 = smov (!%p192_p2), 15   ;;  %627 = vmatprep.mubr.bf16.mxu1 (!%p192_p2), %v1642_v2  ;;  %1627 = vset.pattern.permute.xlu1 (!%p192_p2), %v1642_v2  ;;  %v1732_v5 = vand.u32 (!%p192_p2), 127, %v249_v4  ;;  %v1772_v26 = vld [vmem:[%s2370_s1 + $0x20] sm:$0xff] (!%p192_p2)  ;;  %v1787_v30 = vld [vmem:[%s2370_s1 + $0x30] sm:$0xff] (!%p192_p2)  ;;  %v1792_v31 = vld [vmem:[%s2370_s1 + $0x38] sm:$0xff] (!%p192_p2) }
   0x8   : > { %s1639_s28 = smov (!%p192_p2), 1   ;;  %s1640_s29 = smov (!%p192_p2), 127   ;;  %v1806_v40 = vld [vmem:[%s2370_s1 + $0x40] sm:$0xff] (!%p192_p2)  ;;  %v1811_v41 = vld [vmem:[%s2370_s1 + $0x48] sm:$0xff] (!%p192_p2)  ;;  %v1825_v54 = vld [vmem:[%s2370_s1 + $0x50] sm:$0xff] (!%p192_p2)  ;;  %vm395_vm9 = vcmask (!%p192_p2), 588800  }
   0x9   : > { %s1641_s30 = smov (!%p192_p2), 113   ;;  %s1643_s6 = smov (!%p192_p2), 112   ;;  %vm264_vm0 = vcmp.lt.s32.totalorder (!%p192_p2), %v1732_v5, 16  ;;  %vm251_vm1 = vcmp.lt.s32.totalorder (!%p192_p2), %v1732_v5, 17  ;;  %vm278_vm2 = vcmp.lt.s32.totalorder (!%p192_p2), %v1732_v5, 15  ;;  %vm292_vm3 = vcmp.lt.s32.totalorder (!%p192_p2), %v1732_v5, 1 }
   0xa   : > { %s1644_s7 = smov (!%p192_p2), 111   ;;  %vm308_vm4 = vcmp.lt.s32.totalorder (!%p192_p2), %v1732_v5, 127  ;;  %vm322_vm5 = vcmp.lt.s32.totalorder (!%p192_p2), %v1732_v5, 113  ;;  %vm336_vm6 = vcmp.lt.s32.totalorder (!%p192_p2), %v1732_v5, 112  ;;  %v1831_v55 = vld [vmem:[%s2370_s1 + $0x58] sm:$0xff] (!%p192_p2)  ;;  %v1840_v58 = vld [vmem:[%s2370_s1 + $0x60] sm:$0xff] (!%p192_p2) }
   0xb   : > { %v1845_v59 = vld [vmem:[%s2370_s1 + $0x68] sm:$0xff] (!%p192_p2)  ;;  %vm350_vm7 = vcmp.lt.s32.totalorder (!%p192_p2), %v1732_v5, 111 }
   0xd   : > { %s2376_s20 = smov (!%p225_p3, %s1495_s20), 3 }
   0xe   : > { %s1683_s21 = sshll.u32 %s2376_s20, 3 }
   0xf   : > { %s228_s24 = scalar_lea.vmem %s2369_s0, %s1683_s21  ;;  %s234_s9 = scalar_lea.vmem %s2373_s4, %s1683_s21 }
  0x10   : > { %v1689_v0 = vld [vmem:[%s228_s24] sm:$0xff]  ;;  %v1695_v1 = vld [vmem:[%s228_s24 + $0x8] sm:$0xff]  ;;  %s240_s10 = scalar_lea.vmem %s2374_s5, %s1683_s21 }
  0x11   : > { %260 = vrot.lane.b32.xlu1 %v1689_v0, %s1636_s25  ;;  %245 = vrot.lane.b32.xlu0 %v1689_v0, %s1637_s26 }
  0x15   : > { %262 = vrot.lane.b32.xlu1 %v1695_v1, %s1636_s25  ;;  %247 = vrot.lane.b32.xlu0 %v1695_v1, %s1637_s26 }
  0x19   : > { %276 = vrot.lane.b32.xlu1 %v1695_v1, %s1638_s27  ;;  %274 = vrot.lane.b32.xlu0 %v1689_v0, %s1638_s27 }
  0x1d   : > { %290 = vrot.lane.b32.xlu1 %v1695_v1, %s1639_s28  ;;  %288 = vrot.lane.b32.xlu0 %v1689_v0, %s1639_s28 }
  0x21   : > { %306 = vrot.lane.b32.xlu1 %v1695_v1, %s1640_s29  ;;  %304 = vrot.lane.b32.xlu0 %v1689_v0, %s1640_s29 }
  0x25   : > { %320 = vrot.lane.b32.xlu1 %v1695_v1, %s1641_s30  ;;  %318 = vrot.lane.b32.xlu0 %v1689_v0, %s1641_s30 }
  0x29   : > { %334 = vrot.lane.b32.xlu1 %v1695_v1, %s1643_s6  ;;  %332 = vrot.lane.b32.xlu0 %v1689_v0, %s1643_s6 }
  0x2d   : > { %348 = vrot.lane.b32.xlu1 %v1695_v1, %s1644_s7  ;;  %346 = vrot.lane.b32.xlu0 %v1689_v0, %s1644_s7 }
  0x31   : > { %392 = vperm.xlu0 %1626, %v389_v3  }
  0x83   : > { %v261_v6 = vpop.permute.xlu1 %260  ;;  %v246_v7 = vpop.permute.xlu0 %245 }
  0x87   : > { %v263_v12 = vpop.permute.xlu1 %262  ;;  %v248_v13 = vpop.permute.xlu0 %247 }
  0x88   : > { %v266_v14 = vsel %vm264_vm0, %v263_v12, %v261_v6  ;;  %v253_v15 = vsel %vm251_vm1, %v248_v13, %v246_v7  ;;  %v252_v16 = vsel %vm251_vm1, %v246_v7, %v248_v13  ;;  %v265_v17 = vsel %vm264_vm0, %v261_v6, %v263_v12  ;;  %v1859_v6 = vld [vmem:[%s2370_s1 + $0x70] sm:$0xff]  ;;  %v1864_v7 = vld [vmem:[%s2370_s1 + $0x78] sm:$0xff] }
  0x89   : > { %v257_v18 = vmul.f32 %v1739_v8, %v252_v16  ;;  %v271_v19 = vmul.f32 %v1744_v9, %v265_v17  ;;  %v256_v20 = vmul.f32 %v1749_v10, %v253_v15  ;;  %v270_v21 = vmul.f32 %v1754_v11, %v266_v14 }
  0x8b   : > { %v277_v22 = vpop.permute.xlu1 %276  ;;  %v275_v23 = vpop.permute.xlu0 %274  ;;  %v379_v24 = vpack.c.bf16 %v271_v19, %v257_v18  ;;  %v378_v25 = vpack.c.bf16 %v270_v21, %v256_v20 }
  0x8c   : > { %v279_v28 = vsel %vm278_vm2, %v275_v23, %v277_v22  ;;  %v280_v29 = vsel %vm278_vm2, %v277_v22, %v275_v23  ;;  %v388_v23 = vld [vmem:[%s2371_s2] sm:$0xf] }
  0x8d   : > { %406 = vmatprep.subr.bf16.mxu0 %v379_v24  ;;  %v284_v36 = vmul.f32 %v1772_v26, %v280_v29  ;;  %v285_v37 = vmul.f32 %v1778_v27, %v279_v28 }
  0x8e   : > { %407 = vmatpush1.bf16.msra.mxu0 %v378_v25 }
  0x8f   : > { %v291_v32 = vpop.permute.xlu1 %290  ;;  %v289_v33 = vpop.permute.xlu0 %288 }
  0x90   : > { %v293_v34 = vsel %vm292_vm3, %v289_v33, %v291_v32  ;;  %v294_v35 = vsel %vm292_vm3, %v291_v32, %v289_v33 }
  0x91   : > { %v298_v38 = vmul.f32 %v1787_v30, %v294_v35  ;;  %v299_v39 = vmul.f32 %v1792_v31, %v293_v34 }
  0x93   : > { %v307_v42 = vpop.permute.xlu1 %306  ;;  %v305_v43 = vpop.permute.xlu0 %304  ;;  %v381_v44 = vpack.c.bf16 %v299_v39, %v285_v37  ;;  %v380_v45 = vpack.c.bf16 %v298_v38, %v284_v36  ;;  %v1532_v39 = vld [vmem:[%s2372_s3 + $0x8] sm:$0xff] }
  0x94   : > { %v309_v46 = vsel %vm308_vm4, %v305_v43, %v307_v42  ;;  %v310_v47 = vsel %vm308_vm4, %v307_v42, %v305_v43 }
  0x95   : > { %v314_v48 = vmul.f32 %v1806_v40, %v309_v46  ;;  %v315_v49 = vmul.f32 %v1811_v41, %v310_v47  ;;  %408 = vmatprep.subr.bf16.mxu0 %v381_v44 }
  0x96   : > { %409 = vmatpush1.bf16.msra.mxu0 %v380_v45 }
  0x97   : > { %v321_v50 = vpop.permute.xlu1 %320  ;;  %v319_v51 = vpop.permute.xlu0 %318  ;;  %v383_v52 = vpack.c.bf16 %v315_v49, %v1695_v1  ;;  %v382_v53 = vpack.c.bf16 %v314_v48, %v1689_v0 }
  0x98   : > { %v323_v56 = vsel %vm322_vm5, %v319_v51, %v321_v50  ;;  %v324_v57 = vsel %vm322_vm5, %v321_v50, %v319_v51 }
  0x99   : > { %410 = vmatprep.subr.bf16.mxu0 %v383_v52  ;;  %v328_v0 = vmul.f32 %v1825_v54, %v323_v56  ;;  %v329_v1 = vmul.f32 %v1831_v55, %v324_v57 }
  0x9a   : > { %411 = vmatpush1.bf16.msra.mxu0 %v382_v53 }
  0x9b   : > { %v335_v60 = vpop.permute.xlu1 %334  ;;  %v333_v61 = vpop.permute.xlu0 %332 }
  0x9c   : > { %v337_v62 = vsel %vm336_vm6, %v333_v61, %v335_v60  ;;  %v338_v63 = vsel %vm336_vm6, %v335_v60, %v333_v61 }
  0x9d   : > { %v342_v3 = vmul.f32 %v1840_v58, %v337_v62  ;;  %v343_v4 = vmul.f32 %v1845_v59, %v338_v63 }
  0x9f   : > { %v349_v12 = vpop.permute.xlu1 %348  ;;  %v347_v13 = vpop.permute.xlu0 %346  ;;  %v385_v14 = vpack.c.bf16 %v343_v4, %v329_v1  ;;  %v384_v15 = vpack.c.bf16 %v342_v3, %v328_v0 }
  0xa0   : > { %v351_v16 = vsel %vm350_vm7, %v347_v13, %v349_v12  ;;  %v352_v17 = vsel %vm350_vm7, %v349_v12, %v347_v13 }
  0xa1   : > { %v356_v18 = vmul.f32 %v1859_v6, %v351_v16  ;;  %v357_v19 = vmul.f32 %v1864_v7, %v352_v17  ;;  %412 = vmatprep.subr.bf16.mxu0 %v385_v14 }
  0xa2   : > { %413 = vmatpush1.bf16.msra.mxu0 %v384_v15 }
  0xa3   : > { %v386_v20 = vpack.c.bf16 %v356_v18, %v356_v18  ;;  %v387_v21 = vpack.c.bf16 %v357_v19, %v357_v19 }
  0xa5   : > { %1515 = vmatprep.subr.msk.bf16.mxu0 %vm399_vm8, %v387_v21  ;;  %v401_v22 = vsel %vm399_vm8, %v386_v20, 0 }
  0xa6   : > { %415 = vmatpush1.bf16.msra.mxu0 %v401_v22 }
  0xa9   : > { %1516 = vmatmul.mubr.msk.bf16.vlgmr.msra.gmra.mrb[0].mxu0 %vm395_vm9, %v388_v23 }
  0xaa   : > { %816 = vmatprep.mubr.bf16.mxu0 %v1642_v2 }
  0xb0   : > { %v393_v24 = vpop.permute.xlu0 %392 }
 0x17c   : > { %v440_v25 = vpop.f32.mrb[0].mxu0 }
 0x17d   : > { %v441_v28 = vadd.f32 %v440_v25, %v393_v24  ;;  %v442_v29 = vpop.f32.mrb[1].mxu0 }
 0x17e   : > { %v443_v32 = vadd.f32 %v442_v29, %v393_v24  ;;  %v444_v33 = vpop.f32.mrb[2].mxu0 }
 0x17f   : > { %v447_v34 = vmul.f32 0.1, %v441_v28  ;;  %v445_v35 = vpop.f32.mrb[3].mxu0 }
 0x180   : > { %v448_v37 = vmul.f32 0.1, %v443_v32 }
 0x181   : > { %v1879_v36 = vmax.f32 %v441_v28, %v447_v34 }
 0x182   : > { %v450_v38 = vmax.f32 %v443_v32, %v448_v37 }
 0x183   : > { %463 = vrot.lane.b32.xlu0 %v1879_v36, %s1636_s25  ;;  %451 = vrot.lane.b32.xlu1 %v1879_v36, %s1637_s26 }
 0x187   : > { %475 = vrot.lane.b32.xlu0 %v1879_v36, %s1638_s27  ;;  %453 = vrot.lane.b32.xlu1 %v450_v38, %s1637_s26 }
 0x18b   : > { %487 = vrot.lane.b32.xlu0 %v1879_v36, %s1639_s28  ;;  %465 = vrot.lane.b32.xlu1 %v450_v38, %s1636_s25 }
 0x18f   : > { %501 = vrot.lane.b32.xlu0 %v1879_v36, %s1640_s29  ;;  %477 = vrot.lane.b32.xlu1 %v450_v38, %s1638_s27 }
 0x193   : > { %513 = vrot.lane.b32.xlu0 %v1879_v36, %s1641_s30  ;;  %489 = vrot.lane.b32.xlu1 %v450_v38, %s1639_s28 }
 0x197   : > { %525 = vrot.lane.b32.xlu0 %v1879_v36, %s1643_s6  ;;  %503 = vrot.lane.b32.xlu1 %v450_v38, %s1640_s29 }
 0x19b   : > { %537 = vrot.lane.b32.xlu0 %v1879_v36, %s1644_s7  ;;  %515 = vrot.lane.b32.xlu1 %v450_v38, %s1641_s30 }
 0x19f   : > { %583 = vperm.xlu0 %1626, %v1532_v39   ;;  %527 = vrot.lane.b32.xlu1 %v450_v38, %s1643_s6 }
 0x1a3   : > { %539 = vrot.lane.b32.xlu1 %v450_v38, %s1644_s7 }
 0x1f5   : > { %v464_v42 = vpop.permute.xlu0 %463  ;;  %v452_v43 = vpop.permute.xlu1 %451 }
 0x1f9   : > { %v476_v44 = vpop.permute.xlu0 %475  ;;  %v454_v45 = vpop.permute.xlu1 %453 }
 0x1fa   : > { %v455_v46 = vsel %vm251_vm1, %v452_v43, %v454_v45  ;;  %v456_v47 = vsel %vm251_vm1, %v454_v45, %v452_v43 }
 0x1fb   : > { %v459_v52 = vmul.f32 %v456_v47, %v1749_v10  ;;  %v460_v56 = vmul.f32 %v455_v46, %v1739_v8 }
 0x1fd   : > { %v488_v48 = vpop.permute.xlu0 %487  ;;  %v466_v49 = vpop.permute.xlu1 %465 }
 0x1fe   : > { %v467_v50 = vsel %vm264_vm0, %v464_v42, %v466_v49  ;;  %v468_v51 = vsel %vm264_vm0, %v466_v49, %v464_v42 }
 0x1ff   : > { %v471_v53 = vmul.f32 %v1754_v11, %v468_v51  ;;  %v472_v57 = vmul.f32 %v1744_v9, %v467_v50 }
 0x201   : > { %v478_v60 = vpop.permute.xlu1 %477  ;;  %v568_v61 = vpack.c.bf16 %v472_v57, %v460_v56  ;;  %v567_v62 = vpack.c.bf16 %v471_v53, %v459_v52  ;;  %v502_v63 = vpop.permute.xlu0 %501  ;;  %v1531_v57 = vld [vmem:[%s2371_s2 + $0x4] sm:$0xf] }
 0x202   : > { %v479_v0 = vsel %vm278_vm2, %v476_v44, %v478_v60  ;;  %v480_v1 = vsel %vm278_vm2, %v478_v60, %v476_v44 }
 0x203   : > { %595 = vmatprep.subr.bf16.mxu1 %v568_v61  ;;  %v483_v13 = vmul.f32 %v1772_v26, %v480_v1  ;;  %v484_v14 = vmul.f32 %v1778_v27, %v479_v0 }
 0x204   : > { %596 = vmatpush1.bf16.msra.mxu1 %v567_v62 }
 0x205   : > { %v490_v3 = vpop.permute.xlu1 %489  ;;  %v514_v17 = vpop.permute.xlu0 %513 }
 0x206   : > { %v491_v4 = vsel %vm292_vm3, %v488_v48, %v490_v3  ;;  %v492_v12 = vsel %vm292_vm3, %v490_v3, %v488_v48 }
 0x207   : > { %v495_v15 = vmul.f32 %v1787_v30, %v492_v12  ;;  %v496_v16 = vmul.f32 %v1792_v31, %v491_v4 }
 0x209   : > { %v504_v18 = vpop.permute.xlu1 %503  ;;  %v570_v19 = vpack.c.bf16 %v496_v16, %v484_v14  ;;  %v569_v20 = vpack.c.bf16 %v495_v15, %v483_v13  ;;  %v526_v32 = vpop.permute.xlu0 %525  ;;  %v1550_v15 = vld [vmem:[%s2372_s3 + $0x10] sm:$0xff] }
 0x20a   : > { %v505_v21 = vsel %vm308_vm4, %v502_v63, %v504_v18  ;;  %v506_v22 = vsel %vm308_vm4, %v504_v18, %v502_v63 }
 0x20b   : > { %v509_v23 = vmul.f32 %v1806_v40, %v505_v21  ;;  %v510_v24 = vmul.f32 %v1811_v41, %v506_v22  ;;  %597 = vmatprep.subr.bf16.mxu1 %v570_v19 }
 0x20c   : > { %598 = vmatpush1.bf16.msra.mxu1 %v569_v20 }
 0x20d   : > { %v516_v25 = vpop.permute.xlu1 %515  ;;  %v572_v28 = vpack.c.bf16 %v510_v24, %v450_v38  ;;  %v571_v29 = vpack.c.bf16 %v509_v23, %v1879_v36  ;;  %v538_v44 = vpop.permute.xlu0 %537 }
 0x20e   : > { %v517_v33 = vsel %vm322_vm5, %v514_v17, %v516_v25  ;;  %v518_v34 = vsel %vm322_vm5, %v516_v25, %v514_v17 }
 0x20f   : > { %599 = vmatprep.subr.bf16.mxu1 %v572_v28  ;;  %v521_v38 = vmul.f32 %v1825_v54, %v517_v33  ;;  %v522_v36 = vmul.f32 %v1831_v55, %v518_v34 }
 0x210   : > { %600 = vmatpush1.bf16.msra.mxu1 %v571_v29 }
 0x211   : > { %v528_v35 = vpop.permute.xlu1 %527 }
 0x212   : > { %v529_v37 = vsel %vm336_vm6, %v526_v32, %v528_v35  ;;  %v530_v39 = vsel %vm336_vm6, %v528_v35, %v526_v32 }
 0x213   : > { %v533_v42 = vmul.f32 %v1840_v58, %v529_v37  ;;  %v534_v43 = vmul.f32 %v1845_v59, %v530_v39 }
 0x215   : > { %v540_v45 = vpop.permute.xlu1 %539  ;;  %v574_v46 = vpack.c.bf16 %v534_v43, %v522_v36  ;;  %v573_v47 = vpack.c.bf16 %v533_v42, %v521_v38 }
 0x216   : > { %v541_v48 = vsel %vm350_vm7, %v538_v44, %v540_v45  ;;  %v542_v49 = vsel %vm350_vm7, %v540_v45, %v538_v44 }
 0x217   : > { %v545_v50 = vmul.f32 %v1859_v6, %v541_v48  ;;  %v546_v51 = vmul.f32 %v1864_v7, %v542_v49  ;;  %601 = vmatprep.subr.bf16.mxu1 %v574_v46 }
 0x218   : > { %602 = vmatpush1.bf16.msra.mxu1 %v573_v47 }
 0x219   : > { %v575_v52 = vpack.c.bf16 %v545_v50, %v545_v50  ;;  %v576_v53 = vpack.c.bf16 %v546_v51, %v546_v51 }
 0x21b   : > { %1533 = vmatprep.subr.msk.bf16.mxu1 %vm399_vm8, %v576_v53  ;;  %v590_v56 = vsel %vm399_vm8, %v575_v52, 0 }
 0x21c   : > { %604 = vmatpush1.bf16.msra.mxu1 %v590_v56 }
 0x21e   : > { %v584_v60 = vpop.permute.xlu0 %583 }
 0x21f   : > { %1534 = vmatmul.mubr.msk.bf16.vlgmr.msra.gmra.mrb[0].mxu1 %vm395_vm9, %v1531_v57 }
 0x220   : > { %1007 = vmatprep.mubr.bf16.mxu1 %v1642_v2 }
 0x2f2   : > { %v629_v61 = vpop.f32.mrb[0].mxu1 }
 0x2f3   : > { %v630_v62 = vadd.f32 %v629_v61, %v584_v60  ;;  %v631_v63 = vpop.f32.mrb[1].mxu1 }
 0x2f4   : > { %v632_v0 = vadd.f32 %v631_v63, %v584_v60  ;;  %v633_v1 = vpop.f32.mrb[2].mxu1 }
 0x2f5   : > { %v636_v3 = vmul.f32 0.1, %v630_v62  ;;  %v634_v4 = vpop.f32.mrb[3].mxu1 }
 0x2f6   : > { %v637_v12 = vmul.f32 0.1, %v632_v0 }
 0x2f7   : > { %v1964_v13 = vmax.f32 %v630_v62, %v636_v3 }
 0x2f8   : > { %v639_v14 = vmax.f32 %v632_v0, %v637_v12 }
 0x2f9   : > { %640 = vrot.lane.b32.xlu1 %v1964_v13, %s1637_s26 }
 0x2fa   : > { %642 = vrot.lane.b32.xlu0 %v639_v14, %s1637_s26 }
 0x2fd   : > { %652 = vrot.lane.b32.xlu1 %v1964_v13, %s1636_s25 }
 0x2fe   : > { %654 = vrot.lane.b32.xlu0 %v639_v14, %s1636_s25 }
 0x301   : > { %664 = vrot.lane.b32.xlu1 %v1964_v13, %s1638_s27 }
 0x302   : > { %666 = vrot.lane.b32.xlu0 %v639_v14, %s1638_s27 }
 0x305   : > { %676 = vrot.lane.b32.xlu1 %v1964_v13, %s1639_s28 }
 0x306   : > { %678 = vrot.lane.b32.xlu0 %v639_v14, %s1639_s28 }
 0x309   : > { %690 = vrot.lane.b32.xlu1 %v1964_v13, %s1640_s29 }
 0x30a   : > { %692 = vrot.lane.b32.xlu0 %v639_v14, %s1640_s29 }
 0x30d   : > { %702 = vrot.lane.b32.xlu1 %v1964_v13, %s1641_s30 }
 0x30e   : > { %704 = vrot.lane.b32.xlu0 %v639_v14, %s1641_s30 }
 0x311   : > { %714 = vrot.lane.b32.xlu1 %v1964_v13, %s1643_s6 }
 0x312   : > { %716 = vrot.lane.b32.xlu0 %v639_v14, %s1643_s6 }
 0x315   : > { %726 = vrot.lane.b32.xlu1 %v1964_v13, %s1644_s7 }
 0x316   : > { %728 = vrot.lane.b32.xlu0 %v639_v14, %s1644_s7 }
 0x319   : > { %772 = vperm.xlu1 %1627, %v1550_v15  }
 0x36b   : > { %v641_v16 = vpop.permute.xlu1 %640 }
 0x36c   : > { %v643_v17 = vpop.permute.xlu0 %642 }
 0x36d   : > { %v644_v18 = vsel %vm251_vm1, %v641_v16, %v643_v17  ;;  %v645_v19 = vsel %vm251_vm1, %v643_v17, %v641_v16 }
 0x36e   : > { %v648_v24 = vmul.f32 %v645_v19, %v1749_v10  ;;  %v649_v25 = vmul.f32 %v644_v18, %v1739_v8 }
 0x36f   : > { %v653_v20 = vpop.permute.xlu1 %652 }
 0x370   : > { %v655_v21 = vpop.permute.xlu0 %654 }
 0x371   : > { %v656_v22 = vsel %vm264_vm0, %v653_v20, %v655_v21  ;;  %v657_v23 = vsel %vm264_vm0, %v655_v21, %v653_v20 }
 0x372   : > { %v660_v28 = vmul.f32 %v1754_v11, %v657_v23  ;;  %v661_v29 = vmul.f32 %v1744_v9, %v656_v22 }
 0x373   : > { %v665_v32 = vpop.permute.xlu1 %664 }
 0x374   : > { %v756_v33 = vpack.c.bf16 %v660_v28, %v648_v24  ;;  %v667_v34 = vpop.permute.xlu0 %666  ;;  %v757_v35 = vpack.c.bf16 %v661_v29, %v649_v25 }
 0x375   : > { %v668_v37 = vsel %vm278_vm2, %v665_v32, %v667_v34  ;;  %v669_v39 = vsel %vm278_vm2, %v667_v34, %v665_v32 }
 0x376   : > { %784 = vmatprep.subr.bf16.mxu0 %v757_v35  ;;  %v672_v44 = vmul.f32 %v1772_v26, %v669_v39  ;;  %v673_v45 = vmul.f32 %v1778_v27, %v668_v37 }
 0x377   : > { %785 = vmatpush1.bf16.msra.mxu0 %v756_v33  ;;  %v677_v38 = vpop.permute.xlu1 %676  ;;  %v1549_v33 = vld [vmem:[%s2371_s2 + $0x8] sm:$0xf] }
 0x378   : > { %v679_v36 = vpop.permute.xlu0 %678 }
 0x379   : > { %v680_v42 = vsel %vm292_vm3, %v677_v38, %v679_v36  ;;  %v681_v43 = vsel %vm292_vm3, %v679_v36, %v677_v38 }
 0x37a   : > { %v684_v46 = vmul.f32 %v1787_v30, %v681_v43  ;;  %v685_v47 = vmul.f32 %v1792_v31, %v680_v42 }
 0x37b   : > { %v691_v48 = vpop.permute.xlu1 %690 }
 0x37c   : > { %v758_v49 = vpack.c.bf16 %v684_v46, %v672_v44  ;;  %v693_v50 = vpop.permute.xlu0 %692  ;;  %v759_v51 = vpack.c.bf16 %v685_v47, %v673_v45  ;;  %v1568_v47 = vld [vmem:[%s2372_s3 + $0x18] sm:$0xff] }
 0x37d   : > { %v694_v52 = vsel %vm308_vm4, %v691_v48, %v693_v50  ;;  %v695_v53 = vsel %vm308_vm4, %v693_v50, %v691_v48 }
 0x37e   : > { %v698_v56 = vmul.f32 %v1806_v40, %v694_v52  ;;  %v699_v57 = vmul.f32 %v1811_v41, %v695_v53  ;;  %786 = vmatprep.subr.bf16.mxu0 %v759_v51 }
 0x37f   : > { %787 = vmatpush1.bf16.msra.mxu0 %v758_v49  ;;  %v703_v60 = vpop.permute.xlu1 %702 }
 0x380   : > { %v760_v61 = vpack.c.bf16 %v698_v56, %v1964_v13  ;;  %v705_v62 = vpop.permute.xlu0 %704  ;;  %v761_v63 = vpack.c.bf16 %v699_v57, %v639_v14 }
 0x381   : > { %v706_v0 = vsel %vm322_vm5, %v703_v60, %v705_v62  ;;  %v707_v1 = vsel %vm322_vm5, %v705_v62, %v703_v60 }
 0x382   : > { %788 = vmatprep.subr.bf16.mxu0 %v761_v63  ;;  %v710_v13 = vmul.f32 %v1825_v54, %v706_v0  ;;  %v711_v14 = vmul.f32 %v1831_v55, %v707_v1 }
 0x383   : > { %789 = vmatpush1.bf16.msra.mxu0 %v760_v61  ;;  %v715_v3 = vpop.permute.xlu1 %714 }
 0x384   : > { %v717_v4 = vpop.permute.xlu0 %716 }
 0x385   : > { %v718_v12 = vsel %vm336_vm6, %v715_v3, %v717_v4  ;;  %v719_v15 = vsel %vm336_vm6, %v717_v4, %v715_v3 }
 0x386   : > { %v722_v16 = vmul.f32 %v1840_v58, %v718_v12  ;;  %v723_v17 = vmul.f32 %v1845_v59, %v719_v15 }
 0x387   : > { %v727_v18 = vpop.permute.xlu1 %726 }
 0x388   : > { %v762_v19 = vpack.c.bf16 %v722_v16, %v710_v13  ;;  %v729_v20 = vpop.permute.xlu0 %728  ;;  %v763_v21 = vpack.c.bf16 %v723_v17, %v711_v14 }
 0x389   : > { %v730_v22 = vsel %vm350_vm7, %v727_v18, %v729_v20  ;;  %v731_v23 = vsel %vm350_vm7, %v729_v20, %v727_v18 }
 0x38a   : > { %v734_v24 = vmul.f32 %v1859_v6, %v730_v22  ;;  %v735_v25 = vmul.f32 %v1864_v7, %v731_v23  ;;  %790 = vmatprep.subr.bf16.mxu0 %v763_v21 }
 0x38b   : > { %791 = vmatpush1.bf16.msra.mxu0 %v762_v19 }
 0x38c   : > { %v764_v28 = vpack.c.bf16 %v734_v24, %v734_v24  ;;  %v765_v29 = vpack.c.bf16 %v735_v25, %v735_v25 }
 0x38e   : > { %1551 = vmatprep.subr.msk.bf16.mxu0 %vm399_vm8, %v765_v29  ;;  %v779_v32 = vsel %vm399_vm8, %v764_v28, 0 }
 0x38f   : > { %793 = vmatpush1.bf16.msra.mxu0 %v779_v32 }
 0x392   : > { %1552 = vmatmul.mubr.msk.bf16.vlgmr.msra.gmra.mrb[4].mxu0 %vm395_vm9, %v1549_v33 }
 0x393   : > { %1196 = vmatprep.mubr.bf16.mxu0 %v1642_v2 }
 0x398   : > { %v773_v34 = vpop.permute.xlu1 %772 }
 0x465   : > { %v818_v35 = vpop.f32.mrb[4].mxu0 }
 0x466   : > { %v819_v37 = vadd.f32 %v818_v35, %v773_v34  ;;  %v820_v39 = vpop.f32.mrb[5].mxu0 }
 0x467   : > { %v821_v38 = vadd.f32 %v820_v39, %v773_v34  ;;  %v822_v36 = vpop.f32.mrb[6].mxu0 }
 0x468   : > { %v825_v42 = vmul.f32 0.1, %v819_v37  ;;  %v823_v43 = vpop.f32.mrb[7].mxu0 }
 0x469   : > { %v826_v44 = vmul.f32 0.1, %v821_v38 }
 0x46a   : > { %v2053_v45 = vmax.f32 %v819_v37, %v825_v42 }
 0x46b   : > { %v2055_v46 = vmax.f32 %v821_v38, %v826_v44 }
 0x46c   : > { %829 = vst [vmem:[%s234_s9] sm:$0xff] %v2053_v45  ;;  %831 = vrot.lane.b32.xlu0 %v2053_v45, %s1637_s26 }
 0x46d   : > { %830 = vst [vmem:[%s234_s9 + $0x8] sm:$0xff] %v2055_v46  ;;  %833 = vrot.lane.b32.xlu1 %v2055_v46, %s1637_s26 }
 0x470   : > { %843 = vrot.lane.b32.xlu0 %v2053_v45, %s1636_s25 }
 0x471   : > { %845 = vrot.lane.b32.xlu1 %v2055_v46, %s1636_s25 }
 0x474   : > { %855 = vrot.lane.b32.xlu0 %v2053_v45, %s1638_s27 }
 0x475   : > { %857 = vrot.lane.b32.xlu1 %v2055_v46, %s1638_s27 }
 0x478   : > { %867 = vrot.lane.b32.xlu0 %v2053_v45, %s1639_s28 }
 0x479   : > { %869 = vrot.lane.b32.xlu1 %v2055_v46, %s1639_s28 }
 0x47c   : > { %881 = vrot.lane.b32.xlu0 %v2053_v45, %s1640_s29 }
 0x47d   : > { %883 = vrot.lane.b32.xlu1 %v2055_v46, %s1640_s29 }
 0x480   : > { %893 = vrot.lane.b32.xlu0 %v2053_v45, %s1641_s30 }
 0x481   : > { %895 = vrot.lane.b32.xlu1 %v2055_v46, %s1641_s30 }
 0x484   : > { %905 = vrot.lane.b32.xlu0 %v2053_v45, %s1643_s6 }
 0x485   : > { %907 = vrot.lane.b32.xlu1 %v2055_v46, %s1643_s6 }
 0x488   : > { %917 = vrot.lane.b32.xlu0 %v2053_v45, %s1644_s7 }
 0x489   : > { %919 = vrot.lane.b32.xlu1 %v2055_v46, %s1644_s7 }
 0x48c   : > { %963 = vperm.xlu0 %1626, %v1568_v47  }
 0x4de   : > { %v832_v48 = vpop.permute.xlu0 %831 }
 0x4df   : > { %v834_v49 = vpop.permute.xlu1 %833 }
 0x4e0   : > { %v835_v50 = vsel %vm251_vm1, %v832_v48, %v834_v49  ;;  %v836_v51 = vsel %vm251_vm1, %v834_v49, %v832_v48 }
 0x4e1   : > { %v839_v60 = vmul.f32 %v836_v51, %v1749_v10  ;;  %v840_v61 = vmul.f32 %v835_v50, %v1739_v8 }
 0x4e2   : > { %v844_v52 = vpop.permute.xlu0 %843 }
 0x4e3   : > { %v846_v53 = vpop.permute.xlu1 %845 }
 0x4e4   : > { %v847_v56 = vsel %vm264_vm0, %v844_v52, %v846_v53  ;;  %v848_v57 = vsel %vm264_vm0, %v846_v53, %v844_v52 }
 0x4e5   : > { %v851_v62 = vmul.f32 %v1754_v11, %v848_v57  ;;  %v852_v63 = vmul.f32 %v1744_v9, %v847_v56 }
 0x4e6   : > { %v856_v0 = vpop.permute.xlu0 %855 }
 0x4e7   : > { %v947_v1 = vpack.c.bf16 %v851_v62, %v839_v60  ;;  %v858_v3 = vpop.permute.xlu1 %857  ;;  %v948_v4 = vpack.c.bf16 %v852_v63, %v840_v61 }
 0x4e8   : > { %v859_v12 = vsel %vm278_vm2, %v856_v0, %v858_v3  ;;  %v860_v15 = vsel %vm278_vm2, %v858_v3, %v856_v0 }
 0x4e9   : > { %975 = vmatprep.subr.bf16.mxu1 %v948_v4  ;;  %v863_v18 = vmul.f32 %v1772_v26, %v860_v15  ;;  %v864_v19 = vmul.f32 %v1778_v27, %v859_v12 }
 0x4ea   : > { %976 = vmatpush1.bf16.msra.mxu1 %v947_v1  ;;  %v868_v13 = vpop.permute.xlu0 %867  ;;  %v1567_v1 = vld [vmem:[%s2371_s2 + $0xc] sm:$0xf] }
 0x4eb   : > { %v870_v14 = vpop.permute.xlu1 %869 }
 0x4ec   : > { %v871_v16 = vsel %vm292_vm3, %v868_v13, %v870_v14  ;;  %v872_v17 = vsel %vm292_vm3, %v870_v14, %v868_v13 }
 0x4ed   : > { %v875_v20 = vmul.f32 %v1787_v30, %v872_v17  ;;  %v876_v21 = vmul.f32 %v1792_v31, %v871_v16 }
 0x4ee   : > { %v882_v22 = vpop.permute.xlu0 %881 }
 0x4ef   : > { %v949_v23 = vpack.c.bf16 %v875_v20, %v863_v18  ;;  %v884_v24 = vpop.permute.xlu1 %883  ;;  %v950_v25 = vpack.c.bf16 %v876_v21, %v864_v19 }
 0x4f0   : > { %v885_v28 = vsel %vm308_vm4, %v882_v22, %v884_v24  ;;  %v886_v29 = vsel %vm308_vm4, %v884_v24, %v882_v22 }
 0x4f1   : > { %v889_v32 = vmul.f32 %v1806_v40, %v885_v28  ;;  %v890_v33 = vmul.f32 %v1811_v41, %v886_v29  ;;  %977 = vmatprep.subr.bf16.mxu1 %v950_v25 }
 0x4f2   : > { %978 = vmatpush1.bf16.msra.mxu1 %v949_v23  ;;  %v894_v34 = vpop.permute.xlu0 %893 }
 0x4f3   : > { %v951_v35 = vpack.c.bf16 %v889_v32, %v2053_v45  ;;  %v896_v37 = vpop.permute.xlu1 %895  ;;  %v952_v39 = vpack.c.bf16 %v890_v33, %v2055_v46 }
 0x4f4   : > { %v897_v38 = vsel %vm322_vm5, %v894_v34, %v896_v37  ;;  %v898_v36 = vsel %vm322_vm5, %v896_v37, %v894_v34 }
 0x4f5   : > { %979 = vmatprep.subr.bf16.mxu1 %v952_v39  ;;  %v901_v45 = vmul.f32 %v1825_v54, %v897_v38  ;;  %v902_v46 = vmul.f32 %v1831_v55, %v898_v36 }
 0x4f6   : > { %980 = vmatpush1.bf16.msra.mxu1 %v951_v35  ;;  %v906_v42 = vpop.permute.xlu0 %905 }
 0x4f7   : > { %v908_v43 = vpop.permute.xlu1 %907 }
 0x4f8   : > { %v909_v44 = vsel %vm336_vm6, %v906_v42, %v908_v43  ;;  %v910_v47 = vsel %vm336_vm6, %v908_v43, %v906_v42 }
 0x4f9   : > { %v913_v48 = vmul.f32 %v1840_v58, %v909_v44  ;;  %v914_v49 = vmul.f32 %v1845_v59, %v910_v47 }
 0x4fa   : > { %v918_v50 = vpop.permute.xlu0 %917 }
 0x4fb   : > { %v953_v51 = vpack.c.bf16 %v913_v48, %v901_v45  ;;  %v920_v52 = vpop.permute.xlu1 %919  ;;  %v954_v53 = vpack.c.bf16 %v914_v49, %v902_v46 }
 0x4fc   : > { %v921_v56 = vsel %vm350_vm7, %v918_v50, %v920_v52  ;;  %v922_v57 = vsel %vm350_vm7, %v920_v52, %v918_v50 }
 0x4fd   : > { %v925_v60 = vmul.f32 %v1859_v6, %v921_v56  ;;  %v926_v61 = vmul.f32 %v1864_v7, %v922_v57  ;;  %981 = vmatprep.subr.bf16.mxu1 %v954_v53 }
 0x4fe   : > { %982 = vmatpush1.bf16.msra.mxu1 %v953_v51 }
 0x4ff   : > { %v955_v62 = vpack.c.bf16 %v925_v60, %v925_v60  ;;  %v956_v63 = vpack.c.bf16 %v926_v61, %v926_v61 }
 0x501   : > { %1569 = vmatprep.subr.msk.bf16.mxu1 %vm399_vm8, %v956_v63  ;;  %v970_v0 = vsel %vm399_vm8, %v955_v62, 0 }
 0x502   : > { %984 = vmatpush1.bf16.msra.mxu1 %v970_v0 }
 0x505   : > { %1570 = vmatmul.mubr.msk.bf16.vlgmr.msra.gmra.mrb[4].mxu1 %vm395_vm9, %v1567_v1 }
 0x506   : > { %1385 = vmatprep.mubr.bf16.mxu1 %v1642_v2  ;;  %v1586_v2 = vld [vmem:[%s2372_s3 + $0x20] sm:$0xff] }
 0x50b   : > { %v964_v3 = vpop.permute.xlu0 %963 }
 0x5d8   : > { %v1009_v4 = vpop.f32.mrb[4].mxu1 }
 0x5d9   : > { %v1010_v12 = vadd.f32 %v1009_v4, %v964_v3  ;;  %v1011_v15 = vpop.f32.mrb[5].mxu1 }
 0x5da   : > { %v1012_v13 = vadd.f32 %v1011_v15, %v964_v3  ;;  %v1013_v14 = vpop.f32.mrb[6].mxu1 }
 0x5db   : > { %v1016_v16 = vmul.f32 0.1, %v1010_v12  ;;  %v1014_v17 = vpop.f32.mrb[7].mxu1 }
 0x5dc   : > { %v1017_v18 = vmul.f32 0.1, %v1012_v13 }
 0x5dd   : > { %v2151_v19 = vmax.f32 %v1010_v12, %v1016_v16 }
 0x5de   : > { %v1019_v20 = vmax.f32 %v1012_v13, %v1017_v18 }
 0x5df   : > { %1020 = vrot.lane.b32.xlu1 %v2151_v19, %s1637_s26 }
 0x5e0   : > { %1022 = vrot.lane.b32.xlu0 %v1019_v20, %s1637_s26 }
 0x5e3   : > { %1032 = vrot.lane.b32.xlu1 %v2151_v19, %s1636_s25 }
 0x5e4   : > { %1034 = vrot.lane.b32.xlu0 %v1019_v20, %s1636_s25 }
 0x5e7   : > { %1044 = vrot.lane.b32.xlu1 %v2151_v19, %s1638_s27 }
 0x5e8   : > { %1046 = vrot.lane.b32.xlu0 %v1019_v20, %s1638_s27 }
 0x5eb   : > { %1056 = vrot.lane.b32.xlu1 %v2151_v19, %s1639_s28 }
 0x5ec   : > { %1058 = vrot.lane.b32.xlu0 %v1019_v20, %s1639_s28 }
 0x5ef   : > { %1070 = vrot.lane.b32.xlu1 %v2151_v19, %s1640_s29 }
 0x5f0   : > { %1072 = vrot.lane.b32.xlu0 %v1019_v20, %s1640_s29 }
 0x5f3   : > { %1082 = vrot.lane.b32.xlu1 %v2151_v19, %s1641_s30 }
 0x5f4   : > { %1084 = vrot.lane.b32.xlu0 %v1019_v20, %s1641_s30 }
 0x5f7   : > { %1094 = vrot.lane.b32.xlu1 %v2151_v19, %s1643_s6 }
 0x5f8   : > { %1096 = vrot.lane.b32.xlu0 %v1019_v20, %s1643_s6 }
 0x5fb   : > { %1106 = vrot.lane.b32.xlu1 %v2151_v19, %s1644_s7 }
 0x5fc   : > { %1108 = vrot.lane.b32.xlu0 %v1019_v20, %s1644_s7 }
 0x5ff   : > { %1152 = vperm.xlu1 %1627, %v1586_v2  }
 0x651   : > { %v1021_v21 = vpop.permute.xlu1 %1020 }
 0x652   : > { %v1023_v22 = vpop.permute.xlu0 %1022 }
 0x653   : > { %v1024_v23 = vsel %vm251_vm1, %v1021_v21, %v1023_v22  ;;  %v1025_v24 = vsel %vm251_vm1, %v1023_v22, %v1021_v21 }
 0x654   : > { %v1028_v33 = vmul.f32 %v1025_v24, %v1749_v10  ;;  %v1029_v34 = vmul.f32 %v1024_v23, %v1739_v8 }
 0x655   : > { %v1033_v25 = vpop.permute.xlu1 %1032 }
 0x656   : > { %v1035_v28 = vpop.permute.xlu0 %1034 }
 0x657   : > { %v1036_v29 = vsel %vm264_vm0, %v1033_v25, %v1035_v28  ;;  %v1037_v32 = vsel %vm264_vm0, %v1035_v28, %v1033_v25 }
 0x658   : > { %v1040_v35 = vmul.f32 %v1754_v11, %v1037_v32  ;;  %v1041_v37 = vmul.f32 %v1744_v9, %v1036_v29 }
 0x659   : > { %v1045_v39 = vpop.permute.xlu1 %1044 }
 0x65a   : > { %v1136_v38 = vpack.c.bf16 %v1040_v35, %v1028_v33  ;;  %v1047_v36 = vpop.permute.xlu0 %1046  ;;  %v1137_v42 = vpack.c.bf16 %v1041_v37, %v1029_v34  ;;  %v1604_v33 = vld [vmem:[%s2372_s3 + $0x28] sm:$0xff]  ;;  %v1215_v37 = vld [vmem:[%s2370_s1] sm:$0xff] }
 0x65b   : > { %v1048_v43 = vsel %vm278_vm2, %v1045_v39, %v1047_v36  ;;  %v1049_v44 = vsel %vm278_vm2, %v1047_v36, %v1045_v39  ;;  %v1216_v39 = vld [vmem:[%s2370_s1 + $0x8] sm:$0xff] }
 0x65c   : > { %1164 = vmatprep.subr.bf16.mxu0 %v1137_v42  ;;  %v1052_v11 = vmul.f32 %v1772_v26, %v1049_v44  ;;  %v1053_v45 = vmul.f32 %v1778_v27, %v1048_v43  ;;  %v1589_v43 = vld [vmem:[%s2370_s1 + $0x10] sm:$0xff]  ;;  %v1590_v44 = vld [vmem:[%s2370_s1 + $0x18] sm:$0xff] }
 0x65d   : > { %1165 = vmatpush1.bf16.msra.mxu0 %v1136_v38  ;;  %v1057_v47 = vpop.permute.xlu1 %1056 }
 0x65e   : > { %v1059_v10 = vpop.permute.xlu0 %1058 }
 0x65f   : > { %v1060_v8 = vsel %vm292_vm3, %v1057_v47, %v1059_v10  ;;  %v1061_v9 = vsel %vm292_vm3, %v1059_v10, %v1057_v47 }
 0x660   : > { %v1064_v46 = vmul.f32 %v1787_v30, %v1061_v9  ;;  %v1065_v48 = vmul.f32 %v1792_v31, %v1060_v8 }
 0x661   : > { %v1071_v49 = vpop.permute.xlu1 %1070 }
 0x662   : > { %v1138_v50 = vpack.c.bf16 %v1064_v46, %v1052_v11  ;;  %v1073_v51 = vpop.permute.xlu0 %1072  ;;  %v1139_v52 = vpack.c.bf16 %v1065_v48, %v1053_v45 }
 0x663   : > { %v1074_v53 = vsel %vm308_vm4, %v1071_v49, %v1073_v51  ;;  %v1075_v56 = vsel %vm308_vm4, %v1073_v51, %v1071_v49 }
 0x664   : > { %v1078_v57 = vmul.f32 %v1806_v40, %v1074_v53  ;;  %v1079_v26 = vmul.f32 %v1811_v41, %v1075_v56  ;;  %1166 = vmatprep.subr.bf16.mxu0 %v1139_v52  ;;  %v1591_v52 = vld [vmem:[%s2370_s1 + $0x20] sm:$0xff]  ;;  %v1592_v53 = vld [vmem:[%s2370_s1 + $0x28] sm:$0xff] }
 0x665   : > { %1167 = vmatpush1.bf16.msra.mxu0 %v1138_v50  ;;  %v1083_v27 = vpop.permute.xlu1 %1082 }
 0x666   : > { %v1140_v30 = vpack.c.bf16 %v1078_v57, %v2151_v19  ;;  %v1085_v31 = vpop.permute.xlu0 %1084  ;;  %v1141_v60 = vpack.c.bf16 %v1079_v26, %v1019_v20  ;;  %v1585_v20 = vld [vmem:[%s2371_s2 + $0x10] sm:$0xf] }
 0x667   : > { %v1086_v61 = vsel %vm322_vm5, %v1083_v27, %v1085_v31  ;;  %v1087_v62 = vsel %vm322_vm5, %v1085_v31, %v1083_v27  ;;  %v1593_v27 = vld [vmem:[%s2370_s1 + $0x30] sm:$0xff] }
 0x668   : > { %1168 = vmatprep.subr.bf16.mxu0 %v1141_v60  ;;  %v1090_v1 = vmul.f32 %v1825_v54, %v1086_v61  ;;  %v1091_v3 = vmul.f32 %v1831_v55, %v1087_v62 }
 0x669   : > { %1169 = vmatpush1.bf16.msra.mxu0 %v1140_v30  ;;  %v1095_v63 = vpop.permute.xlu1 %1094  ;;  %v1594_v30 = vld [vmem:[%s2370_s1 + $0x38] sm:$0xff] }
 0x66a   : > { %v1097_v0 = vpop.permute.xlu0 %1096 }
 0x66b   : > { %v1098_v40 = vsel %vm336_vm6, %v1095_v63, %v1097_v0  ;;  %v1099_v41 = vsel %vm336_vm6, %v1097_v0, %v1095_v63 }
 0x66c   : > { %v1102_v4 = vmul.f32 %v1840_v58, %v1098_v40  ;;  %v1103_v12 = vmul.f32 %v1845_v59, %v1099_v41 }
 0x66d   : > { %v1107_v15 = vpop.permute.xlu1 %1106 }
 0x66e   : > { %v1142_v13 = vpack.c.bf16 %v1102_v4, %v1090_v1  ;;  %v1109_v14 = vpop.permute.xlu0 %1108  ;;  %v1143_v16 = vpack.c.bf16 %v1103_v12, %v1091_v3  ;;  %v1595_v1 = vld [vmem:[%s2370_s1 + $0x40] sm:$0xff]  ;;  %v1596_v3 = vld [vmem:[%s2370_s1 + $0x48] sm:$0xff] }
 0x66f   : > { %v1110_v17 = vsel %vm350_vm7, %v1107_v15, %v1109_v14  ;;  %v1111_v18 = vsel %vm350_vm7, %v1109_v14, %v1107_v15 }
 0x670   : > { %v1114_v19 = vmul.f32 %v1859_v6, %v1110_v17  ;;  %v1115_v54 = vmul.f32 %v1864_v7, %v1111_v18  ;;  %1170 = vmatprep.subr.bf16.mxu0 %v1143_v16 }
 0x671   : > { %1171 = vmatpush1.bf16.msra.mxu0 %v1142_v13 }
 0x672   : > { %v1144_v55 = vpack.c.bf16 %v1114_v19, %v1114_v19  ;;  %v1145_v58 = vpack.c.bf16 %v1115_v54, %v1115_v54 }
 0x674   : > { %1587 = vmatprep.subr.msk.bf16.mxu0 %vm399_vm8, %v1145_v58  ;;  %v1159_v59 = vsel %vm399_vm8, %v1144_v55, 0  ;;  %v1597_v58 = vld [vmem:[%s2370_s1 + $0x50] sm:$0xff] }
 0x675   : > { %1173 = vmatpush1.bf16.msra.mxu0 %v1159_v59  ;;  %v1598_v59 = vld [vmem:[%s2370_s1 + $0x58] sm:$0xff] }
 0x678   : > { %1588 = vmatmul.mubr.msk.bf16.vlgmr.msra.gmra.mrb[8].mxu0 %vm395_vm9, %v1585_v20 }
 0x67e   : > { %v1153_v2 = vpop.permute.xlu1 %1152 }
 0x74b   : > { %v1198_v21 = vpop.f32.mrb[8].mxu0 }
 0x74c   : > { %v1199_v6 = vadd.f32 %v1198_v21, %v1153_v2  ;;  %v1200_v22 = vpop.f32.mrb[9].mxu0 }
 0x74d   : > { %v1201_v7 = vadd.f32 %v1200_v22, %v1153_v2  ;;  %v1202_v23 = vpop.f32.mrb[10].mxu0  ;;  %v1600_v22 = vld [vmem:[%s2370_s1 + $0x68] sm:$0xff] }
 0x74e   : > { %v1205_v24 = vmul.f32 0.1, %v1199_v6  ;;  %v1203_v25 = vpop.f32.mrb[11].mxu0 }
 0x74f   : > { %v1206_v28 = vmul.f32 0.1, %v1201_v7 }
 0x750   : > { %v2235_v29 = vmax.f32 %v1199_v6, %v1205_v24  ;;  %v1599_v6 = vld [vmem:[%s2370_s1 + $0x60] sm:$0xff] }
 0x751   : > { %v2237_v32 = vmax.f32 %v1201_v7, %v1206_v28 }
 0x752   : > { %1209 = vrot.lane.b32.xlu0 %v2235_v29, %s1637_s26 }
 0x753   : > { %1211 = vrot.lane.b32.xlu1 %v2237_v32, %s1637_s26 }
 0x756   : > { %1221 = vrot.lane.b32.xlu0 %v2235_v29, %s1636_s25 }
 0x757   : > { %1223 = vrot.lane.b32.xlu1 %v2237_v32, %s1636_s25 }
 0x75a   : > { %1233 = vrot.lane.b32.xlu0 %v2235_v29, %s1638_s27 }
 0x75b   : > { %1235 = vrot.lane.b32.xlu1 %v2237_v32, %s1638_s27 }
 0x75e   : > { %1245 = vrot.lane.b32.xlu0 %v2235_v29, %s1639_s28 }
 0x75f   : > { %1247 = vrot.lane.b32.xlu1 %v2237_v32, %s1639_s28 }
 0x762   : > { %1259 = vrot.lane.b32.xlu0 %v2235_v29, %s1640_s29 }
 0x763   : > { %1261 = vrot.lane.b32.xlu1 %v2237_v32, %s1640_s29 }
 0x766   : > { %1271 = vrot.lane.b32.xlu0 %v2235_v29, %s1641_s30 }
 0x767   : > { %1273 = vrot.lane.b32.xlu1 %v2237_v32, %s1641_s30 }
 0x76a   : > { %1283 = vrot.lane.b32.xlu0 %v2235_v29, %s1643_s6 }
 0x76b   : > { %1285 = vrot.lane.b32.xlu1 %v2237_v32, %s1643_s6 }
 0x76e   : > { %1295 = vrot.lane.b32.xlu0 %v2235_v29, %s1644_s7 }
 0x76f   : > { %1297 = vrot.lane.b32.xlu1 %v2237_v32, %s1644_s7 }
 0x772   : > { %1341 = vperm.xlu0 %1626, %v1604_v33  }
 0x7c4   : > { %v1210_v34 = vpop.permute.xlu0 %1209 }
 0x7c5   : > { %v1212_v35 = vpop.permute.xlu1 %1211 }
 0x7c6   : > { %v1213_v38 = vsel %vm251_vm1, %v1210_v34, %v1212_v35  ;;  %v1214_v36 = vsel %vm251_vm1, %v1212_v35, %v1210_v34  ;;  %v1601_v34 = vld [vmem:[%s2370_s1 + $0x70] sm:$0xff]  ;;  %v1602_v35 = vld [vmem:[%s2370_s1 + $0x78] sm:$0xff] }
 0x7c7   : > { %v1217_v9 = vmul.f32 %v1215_v37, %v1214_v36  ;;  %v1218_v11 = vmul.f32 %v1216_v39, %v1213_v38 }
 0x7c8   : > { %v1222_v42 = vpop.permute.xlu0 %1221 }
 0x7c9   : > { %v1224_v47 = vpop.permute.xlu1 %1223 }
 0x7ca   : > { %v1225_v10 = vsel %vm264_vm0, %v1222_v42, %v1224_v47  ;;  %v1226_v8 = vsel %vm264_vm0, %v1224_v47, %v1222_v42 }
 0x7cb   : > { %v1229_v45 = vmul.f32 %v1589_v43, %v1226_v8  ;;  %v1230_v46 = vmul.f32 %v1590_v44, %v1225_v10 }
 0x7cc   : > { %v1234_v48 = vpop.permute.xlu0 %1233 }
 0x7cd   : > { %v1325_v49 = vpack.c.bf16 %v1229_v45, %v1217_v9  ;;  %v1236_v50 = vpop.permute.xlu1 %1235  ;;  %v1326_v51 = vpack.c.bf16 %v1230_v46, %v1218_v11  ;;  %v1603_v9 = vld [vmem:[%s2371_s2 + $0x14] sm:$0xf] }
 0x7ce   : > { %v1237_v56 = vsel %vm278_vm2, %v1234_v48, %v1236_v50  ;;  %v1238_v57 = vsel %vm278_vm2, %v1236_v50, %v1234_v48 }
 0x7cf   : > { %1353 = vmatprep.subr.bf16.mxu1 %v1326_v51  ;;  %v1241_v62 = vmul.f32 %v1591_v52, %v1238_v57  ;;  %v1242_v63 = vmul.f32 %v1592_v53, %v1237_v56 }
 0x7d0   : > { %1354 = vmatpush1.bf16.msra.mxu1 %v1325_v49  ;;  %v1246_v26 = vpop.permute.xlu0 %1245 }
 0x7d1   : > { %v1248_v31 = vpop.permute.xlu1 %1247 }
 0x7d2   : > { %v1249_v60 = vsel %vm292_vm3, %v1246_v26, %v1248_v31  ;;  %v1250_v61 = vsel %vm292_vm3, %v1248_v31, %v1246_v26 }
 0x7d3   : > { %v1253_v0 = vmul.f32 %v1593_v27, %v1250_v61  ;;  %v1254_v40 = vmul.f32 %v1594_v30, %v1249_v60 }
 0x7d4   : > { %v1260_v41 = vpop.permute.xlu0 %1259 }
 0x7d5   : > { %v1327_v4 = vpack.c.bf16 %v1253_v0, %v1241_v62  ;;  %v1262_v12 = vpop.permute.xlu1 %1261  ;;  %v1328_v15 = vpack.c.bf16 %v1254_v40, %v1242_v63 }
 0x7d6   : > { %v1263_v13 = vsel %vm308_vm4, %v1260_v41, %v1262_v12  ;;  %v1264_v14 = vsel %vm308_vm4, %v1262_v12, %v1260_v41 }
 0x7d7   : > { %v1267_v16 = vmul.f32 %v1595_v1, %v1263_v13  ;;  %v1268_v17 = vmul.f32 %v1596_v3, %v1264_v14  ;;  %1355 = vmatprep.subr.bf16.mxu1 %v1328_v15 }
 0x7d8   : > { %1356 = vmatpush1.bf16.msra.mxu1 %v1327_v4  ;;  %v1272_v18 = vpop.permute.xlu0 %1271 }
 0x7d9   : > { %v1329_v19 = vpack.c.bf16 %v1267_v16, %v2235_v29  ;;  %v1274_v54 = vpop.permute.xlu1 %1273  ;;  %v1330_v55 = vpack.c.bf16 %v1268_v17, %v2237_v32 }
 0x7da   : > { %v1275_v20 = vsel %vm322_vm5, %v1272_v18, %v1274_v54  ;;  %v1276_v2 = vsel %vm322_vm5, %v1274_v54, %v1272_v18 }
 0x7db   : > { %1357 = vmatprep.subr.bf16.mxu1 %v1330_v55  ;;  %v1279_v25 = vmul.f32 %v1597_v58, %v1275_v20  ;;  %v1280_v28 = vmul.f32 %v1598_v59, %v1276_v2 }
 0x7dc   : > { %1358 = vmatpush1.bf16.msra.mxu1 %v1329_v19  ;;  %v1284_v21 = vpop.permute.xlu0 %1283 }
 0x7dd   : > { %v1286_v7 = vpop.permute.xlu1 %1285 }
 0x7de   : > { %v1287_v23 = vsel %vm336_vm6, %v1284_v21, %v1286_v7  ;;  %v1288_v24 = vsel %vm336_vm6, %v1286_v7, %v1284_v21 }
 0x7df   : > { %v1291_v29 = vmul.f32 %v1599_v6, %v1287_v23  ;;  %v1292_v32 = vmul.f32 %v1600_v22, %v1288_v24 }
 0x7e0   : > { %v1296_v33 = vpop.permute.xlu0 %1295 }
 0x7e1   : > { %v1331_v37 = vpack.c.bf16 %v1291_v29, %v1279_v25  ;;  %v1298_v39 = vpop.permute.xlu1 %1297  ;;  %v1332_v38 = vpack.c.bf16 %v1292_v32, %v1280_v28 }
 0x7e2   : > { %v1299_v36 = vsel %vm350_vm7, %v1296_v33, %v1298_v39  ;;  %v1300_v42 = vsel %vm350_vm7, %v1298_v39, %v1296_v33 }
 0x7e3   : > { %v1303_v43 = vmul.f32 %v1601_v34, %v1299_v36  ;;  %v1304_v44 = vmul.f32 %v1602_v35, %v1300_v42  ;;  %1359 = vmatprep.subr.bf16.mxu1 %v1332_v38 }
 0x7e4   : > { %1360 = vmatpush1.bf16.msra.mxu1 %v1331_v37 }
 0x7e5   : > { %v1333_v47 = vpack.c.bf16 %v1303_v43, %v1303_v43  ;;  %v1334_v10 = vpack.c.bf16 %v1304_v44, %v1304_v44 }
 0x7e7   : > { %1605 = vmatprep.subr.msk.bf16.mxu1 %vm399_vm8, %v1334_v10  ;;  %v1348_v8 = vsel %vm399_vm8, %v1333_v47, 0 }
 0x7e8   : > { %1362 = vmatpush1.bf16.msra.mxu1 %v1348_v8 }
 0x7eb   : > { %1606 = vmatmul.mubr.msk.bf16.vlgmr.msra.gmra.mrb[8].mxu1 %vm395_vm9, %v1603_v9 }
 0x7f1   : > { %v1342_v5 = vpop.permute.xlu0 %1341 }
 0x8be   : > { %v1387_v11 = vpop.f32.mrb[8].mxu1 }
 0x8bf   : > { %v1388_v45 = vadd.f32 %v1387_v11, %v1342_v5  ;;  %v1389_v46 = vpop.f32.mrb[9].mxu1 }
 0x8c0   : > { %v1390_v48 = vadd.f32 %v1389_v46, %v1342_v5  ;;  %v1391_v49 = vpop.f32.mrb[10].mxu1 }
 0x8c1   : > { %v1394_v50 = vmul.f32 0.1, %v1388_v45  ;;  %v1392_v51 = vpop.f32.mrb[11].mxu1 }
 0x8c2   : > { %v1395_v52 = vmul.f32 0.1, %v1390_v48 }
 0x8c3   : > { %v1396_v53 = vmax.f32 %v1388_v45, %v1394_v50 }
 0x8c4   : > { %v1397_v56 = vmax.f32 %v1390_v48, %v1395_v52 }
 0x8c5   : > { %1398 = vst [vmem:[%s240_s10] sm:$0xff] %v1396_v53 }
 0x8c6   : > { %1399 = vst [vmem:[%s240_s10 + $0x8] sm:$0xff] %v1397_v56 }
 0x8c7 PF: > { %s16_s18 = sadd.s32 1, %s1634_s18  }
 0x8c8   : > { %p13_p4 = scmp.ge.s32.totalorder %s16_s18, 4  }
 0x8ca   :  { %15 = sbr.rel (!%p13_p4) target bundleno = 1 (0x1), region = 95 }

</bundles_post_ra>
